<compile_context>
chip_gen: v6e
topology: v6e:2x2x1
jax: 0.10.0
libtpu: 0.0.40
codegen_flags: <defaults>
</compile_context>

<pallas_src>
import jax
import jax.numpy as jnp
from jax.experimental import pallas as pl
from jax.experimental.pallas import tpu as pltpu

# ---- synthetic "pretrained" config (small, stands in for bert-base) ----
VOCAB = 100
MAX_POS = 16
N_TYPES = 2
HIDDEN = 32          # stands in for 768
N_HEADS = 4
HEAD_DIM = HIDDEN // N_HEADS
FFN = 64
N_LAYERS = 2
N_CLASSES = 3
SEQ = 8
BATCH = 2
LN_EPS = 1e-12
BS = BATCH * SEQ     # rows of the flattened activation block

# rows of the packed per-layer vector block (each row padded to FFN lanes)
_BQ, _BK, _BV, _BO, _G1, _BE1, _B1, _B2, _G2, _BE2 = range(10)
N_VECS = 10


# ----------------------------------------------------------------------
# Fused encoder + classifier kernel (gridless; layers looped in-kernel).
# ----------------------------------------------------------------------
def _encoder_kernel(x_ref, mask_ref,
                    wq_ref, wk_ref, wv_ref, wo_ref, w1_ref, w2_ref, vec_ref,
                    wc_ref, bc_ref,
                    o_ref, x_vmem):
    # Additive key-padding bias built in-kernel from the (B, S) mask:
    # 0 for attended keys, -1e9 for padding; broadcast over query positions.
    key_bias = (mask_ref[...] - 1.0) * 1e9            # (B, S) f32
    bias = key_bias[:, None, :]                        # (B, 1, S)

    # Activations stay resident in VMEM scratch across the whole layer loop.
    x_vmem[...] = x_ref[...]

    def layer_body(l, carry):
        x = x_vmem[...]                                # (BS, H) f32
        xb = x.astype(jnp.bfloat16)

        vecs = vec_ref[l]                              # (N_VECS, FFN) f32, one DMA'd block
        bq = vecs[_BQ:_BQ + 1, :HIDDEN]
        bk = vecs[_BK:_BK + 1, :HIDDEN]
        bv = vecs[_BV:_BV + 1, :HIDDEN]
        bo = vecs[_BO:_BO + 1, :HIDDEN]
        g1 = vecs[_G1:_G1 + 1, :HIDDEN]
        be1 = vecs[_BE1:_BE1 + 1, :HIDDEN]
        b1 = vecs[_B1:_B1 + 1, :]                      # (1, FFN)
        b2 = vecs[_B2:_B2 + 1, :HIDDEN]
        g2 = vecs[_G2:_G2 + 1, :HIDDEN]
        be2 = vecs[_BE2:_BE2 + 1, :HIDDEN]

        # --- QKV projections over the whole flattened (B*S, H) block ---
        # (1/sqrt(head_dim) is pre-folded into wq / bq in the wrapper)
        q = jnp.dot(xb, wq_ref[l], preferred_element_type=jnp.float32) + bq
        k = jnp.dot(xb, wk_ref[l], preferred_element_type=jnp.float32) + bk
        v = jnp.dot(xb, wv_ref[l], preferred_element_type=jnp.float32) + bv

        # --- per-batch attention: cast once, reshape (row-tile-aligned) to (B,S,H) ---
        q3 = q.reshape(BATCH, SEQ, HIDDEN).astype(jnp.bfloat16)
        k3 = k.reshape(BATCH, SEQ, HIDDEN).astype(jnp.bfloat16)
        v3 = v.reshape(BATCH, SEQ, HIDDEN).astype(jnp.bfloat16)

        ctx_heads = []
        for h in range(N_HEADS):                       # static unroll over heads
            sl = slice(h * HEAD_DIM, (h + 1) * HEAD_DIM)
            s = jnp.einsum('bqd,bkd->bqk', q3[..., sl], k3[..., sl],
                           preferred_element_type=jnp.float32)      # (B, S, S)
            s = s + bias
            s = s - jnp.max(s, axis=-1, keepdims=True)
            p = jnp.exp(s)
            p = p * pl.reciprocal(jnp.sum(p, axis=-1, keepdims=True), approx=True)
            ctx_heads.append(
                jnp.einsum('bqk,bkd->bqd', p.astype(jnp.bfloat16), v3[..., sl],
                           preferred_element_type=jnp.float32))     # (B, S, HEAD_DIM)

        # lane-concat contexts -> ONE K=HIDDEN output projection
        ctx = jnp.concatenate(ctx_heads, axis=-1).reshape(BS, HIDDEN)
        attn = jnp.dot(ctx.astype(jnp.bfloat16), wo_ref[l],
                       preferred_element_type=jnp.float32) + bo

        # residual + layernorm 1 (f32 elementwise)
        h1 = x + attn
        mu = jnp.mean(h1, axis=-1, keepdims=True)
        var = jnp.mean((h1 - mu) ** 2, axis=-1, keepdims=True)
        h1 = (h1 - mu) * jax.lax.rsqrt(var + LN_EPS) * g1 + be1

        # --- feed-forward ---
        f = jnp.dot(h1.astype(jnp.bfloat16), w1_ref[l],
                    preferred_element_type=jnp.float32) + b1
        # TODO(synk): HF BERT uses exact erf GELU; tanh approximation kept (EUP-friendly).
        f = jax.nn.gelu(f, approximate=True)
        f = jnp.dot(f.astype(jnp.bfloat16), w2_ref[l],
                    preferred_element_type=jnp.float32) + b2

        # residual + layernorm 2
        h2 = h1 + f
        mu2 = jnp.mean(h2, axis=-1, keepdims=True)
        var2 = jnp.mean((h2 - mu2) ** 2, axis=-1, keepdims=True)
        x_vmem[...] = (h2 - mu2) * jax.lax.rsqrt(var2 + LN_EPS) * g2 + be2
        return carry

    jax.lax.fori_loop(0, N_LAYERS, layer_body, 0, unroll=True)

    # CLS rows (row b*SEQ per batch element): strided sublane read, no selector matmul.
    cls = x_vmem[pl.ds(0, BATCH, stride=SEQ), :]       # (B, H)
    o_ref[...] = jnp.dot(cls, wc_ref[...],
                         preferred_element_type=jnp.float32) + bc_ref[...]


# ----------------------------------------------------------------------
# Wrappers
# ----------------------------------------------------------------------
def encoder_forward(x2d, key_mask, stacked, cls_w, cls_b):
    # Gridless call: every operand is far below one (8,128) tile, so everything is
    # pulled into VMEM once and the layer loop runs in-kernel (no per-step overhead).
    return pl.pallas_call(
        _encoder_kernel,
        out_shape=jax.ShapeDtypeStruct((BATCH, N_CLASSES), jnp.float32),
        scratch_shapes=[pltpu.VMEM((BS, HIDDEN), jnp.float32)],
        compiler_params=pltpu.CompilerParams(vmem_limit_bytes=32 * 1024 * 1024),
    )(x2d, key_mask, *stacked, cls_w, cls_b)


def init_params(key):
    ks = jax.random.split(key, 4 + N_LAYERS)
    s = 0.02
    params = {
        "word_emb": s * jax.random.normal(ks[0], (VOCAB, HIDDEN), jnp.float32),
        "pos_emb":  s * jax.random.normal(ks[1], (MAX_POS, HIDDEN), jnp.float32),
        "type_emb": s * jax.random.normal(ks[2], (N_TYPES, HIDDEN), jnp.float32),
        "emb_ln_g": jnp.ones((HIDDEN,), jnp.float32),
        "emb_ln_b": jnp.zeros((HIDDEN,), jnp.float32),
        "cls_w":    s * jax.random.normal(ks[3], (HIDDEN, N_CLASSES), jnp.float32),
        "cls_b":    jnp.zeros((1, N_CLASSES), jnp.float32),
        "layers": [],
    }
    for l in range(N_LAYERS):
        lk = jax.random.split(ks[4 + l], 6)
        params["layers"].append({
            "wq": s * jax.random.normal(lk[0], (HIDDEN, HIDDEN), jnp.float32),
            "bq": jnp.zeros((1, HIDDEN), jnp.float32),
            "wk": s * jax.random.normal(lk[1], (HIDDEN, HIDDEN), jnp.float32),
            "bk": jnp.zeros((1, HIDDEN), jnp.float32),
            "wv": s * jax.random.normal(lk[2], (HIDDEN, HIDDEN), jnp.float32),
            "bv": jnp.zeros((1, HIDDEN), jnp.float32),
            "wo": s * jax.random.normal(lk[3], (HIDDEN, HIDDEN), jnp.float32),
            "bo": jnp.zeros((1, HIDDEN), jnp.float32),
            "ln1_g": jnp.ones((1, HIDDEN), jnp.float32),
            "ln1_b": jnp.zeros((1, HIDDEN), jnp.float32),
            "w1": s * jax.random.normal(lk[4], (HIDDEN, FFN), jnp.float32),
            "b1": jnp.zeros((1, FFN), jnp.float32),
            "w2": s * jax.random.normal(lk[5], (FFN, HIDDEN), jnp.float32),
            "b2": jnp.zeros((1, HIDDEN), jnp.float32),
            "ln2_g": jnp.ones((1, HIDDEN), jnp.float32),
            "ln2_b": jnp.zeros((1, HIDDEN), jnp.float32),
        })
    return params


def pack_layer_weights(params):
    """Stack per-layer weights on a leading layer axis.

    Matmul operands in bf16 (f32 accumulation in-kernel); all small per-layer vectors
    (biases + LN params) are packed into ONE f32 block of shape (L, 10, FFN) so the
    kernel reads a single contiguous slab per layer.  The attention scale is folded
    into wq / bq.
    """
    layers = params["layers"]
    stk = lambda name: jnp.stack([lyr[name] for lyr in layers], axis=0)
    scale = 1.0 / (HEAD_DIM ** 0.5)

    def pad_row(v):                                    # (1, W) -> (FFN,) zero-padded
        v = v.reshape(-1)
        return jnp.pad(v, (0, FFN - v.shape[0]))

    vec_blocks = []
    for lyr in layers:
        rows = [pad_row(lyr["bq"] * scale), pad_row(lyr["bk"]), pad_row(lyr["bv"]),
                pad_row(lyr["bo"]), pad_row(lyr["ln1_g"]), pad_row(lyr["ln1_b"]),
                pad_row(lyr["b1"]), pad_row(lyr["b2"]),
                pad_row(lyr["ln2_g"]), pad_row(lyr["ln2_b"])]
        vec_blocks.append(jnp.stack(rows, axis=0))     # (N_VECS, FFN)
    vecs = jnp.stack(vec_blocks, axis=0)               # (L, N_VECS, FFN) f32

    return [
        (stk("wq") * scale).astype(jnp.bfloat16),      # wq (scale folded)
        stk("wk").astype(jnp.bfloat16),                # wk
        stk("wv").astype(jnp.bfloat16),                # wv
        stk("wo").astype(jnp.bfloat16),                # wo (full K=HIDDEN)
        stk("w1").astype(jnp.bfloat16),                # FFN in
        stk("w2").astype(jnp.bfloat16),                # FFN out
        vecs,                                          # packed vectors
    ]


@jax.jit
def forward(params, input_ids, segment_ids, attention_mask):
    """Mirrors PreTrainedModel.forward: encoder -> hidden[:, 0] -> Linear -> logits."""
    B, S = input_ids.shape
    # TODO(synk): embedding table gather (and loading real pretrained weights) stays in
    # plain JAX; synthetic weights stand in for AutoModel.from_pretrained.
    emb = (params["word_emb"][input_ids]
           + params["pos_emb"][jnp.arange(S)][None, :, :]
           + params["type_emb"][segment_ids])
    mu = emb.mean(-1, keepdims=True)
    var = ((emb - mu) ** 2).mean(-1, keepdims=True)
    x = (emb - mu) / jnp.sqrt(var + LN_EPS) * params["emb_ln_g"] + params["emb_ln_b"]
    x2d = x.astype(jnp.float32).reshape(B * S, HIDDEN)

    # Only the tiny (B, S) key-padding mask is passed; the additive bias is built in-kernel.
    key_mask = attention_mask.astype(jnp.float32)      # 1.0 attend / 0.0 pad

    stacked = pack_layer_weights(params)
    logits = encoder_forward(x2d, key_mask, stacked,
                             params["cls_w"], params["cls_b"])
    return logits


if __name__ == "__main__":
    key = jax.random.PRNGKey(0)
    pkey, ikey = jax.random.split(key)
    params = init_params(pkey)

    input_ids = jax.random.randint(ikey, (BATCH, SEQ), 0, VOCAB, dtype=jnp.int32)
    segment_ids = jnp.zeros((BATCH, SEQ), jnp.int32)
    attention_mask = jnp.ones((BATCH, SEQ), jnp.int32)
    # make one sequence partially padded to exercise the mask
    attention_mask = attention_mask.at[1, SEQ // 2:].set(0)

    logits = forward(params, input_ids, segment_ids, attention_mask)
    jax.block_until_ready(logits)
    assert logits.shape == (BATCH, N_CLASSES)
    assert bool(jnp.all(jnp.isfinite(logits)))
    print("KERNEL_OK")
</pallas_src>

<mosaic_0001>
module attributes {stable_mosaic.version = 11 : i64} {
  func.func @_encoder_kernel(%arg0: memref<16x32xf32, #tpu.memory_space<vmem>>, %arg1: memref<2x8xf32, #tpu.memory_space<vmem>>, %arg2: memref<2x32x32xbf16, #tpu.memory_space<vmem>>, %arg3: memref<2x32x32xbf16, #tpu.memory_space<vmem>>, %arg4: memref<2x32x32xbf16, #tpu.memory_space<vmem>>, %arg5: memref<2x32x32xbf16, #tpu.memory_space<vmem>>, %arg6: memref<2x32x64xbf16, #tpu.memory_space<vmem>>, %arg7: memref<2x64x32xbf16, #tpu.memory_space<vmem>>, %arg8: memref<2x10x64xf32, #tpu.memory_space<vmem>>, %arg9: memref<32x3xf32, #tpu.memory_space<vmem>>, %arg10: memref<1x3xf32, #tpu.memory_space<vmem>>, %arg11: memref<2x3xf32, #tpu.memory_space<vmem>>, %arg12: memref<16x32xf32, #tpu.memory_space<vmem>>) attributes {dimension_semantics = [], scalar_prefetch = 0 : i64, scratch_operands = 1 : i64, tpu.core_type = #tpu.core_type<tc>} {
    %c0 = arith.constant 0 : index
    %c0_0 = arith.constant 0 : index
    %0 = vector.load %arg1[%c0, %c0_0] : memref<2x8xf32, #tpu.memory_space<vmem>>, vector<2x8xf32>
    %cst = arith.constant 1.000000e+00 : f32
    %1 = vector.broadcast %cst : f32 to vector<2x8xf32>
    %2 = arith.subf %0, %1 : vector<2x8xf32>
    %cst_1 = arith.constant 1.000000e+09 : f32
    %3 = vector.broadcast %cst_1 : f32 to vector<2x8xf32>
    %4 = arith.mulf %2, %3 : vector<2x8xf32>
    %5 = vector.shape_cast %4 : vector<2x8xf32> to vector<2x1x8xf32>
    %c0_2 = arith.constant 0 : index
    %c0_3 = arith.constant 0 : index
    %6 = vector.load %arg0[%c0_2, %c0_3] : memref<16x32xf32, #tpu.memory_space<vmem>>, vector<16x32xf32>
    %c0_4 = arith.constant 0 : index
    %c0_5 = arith.constant 0 : index
    %7 = vector.load %arg12[%c0_4, %c0_5] : memref<16x32xf32, #tpu.memory_space<vmem>>, vector<16x32xf32>
    tpu.vector_store %arg12[%c0_4, %c0_5], %6 {strides = array<i32>} : memref<16x32xf32, #tpu.memory_space<vmem>>, vector<16x32xf32>,
    %c0_i32 = arith.constant 0 : i32
    %c0_6 = arith.constant 0 : index
    %c0_7 = arith.constant 0 : index
    %8 = vector.load %arg12[%c0_6, %c0_7] : memref<16x32xf32, #tpu.memory_space<vmem>>, vector<16x32xf32>
    %9 = arith.truncf %8 : vector<16x32xf32> to vector<16x32xbf16>
    %10 = arith.index_cast %c0_i32 : i32 to index
    %c0_8 = arith.constant 0 : index
    %c0_9 = arith.constant 0 : index
    %11 = vector.load %arg8[%10, %c0_8, %c0_9] : memref<2x10x64xf32, #tpu.memory_space<vmem>>, vector<1x10x64xf32>
    %12 = vector.shape_cast %11 : vector<1x10x64xf32> to vector<10x64xf32>
    %13 = vector.extract_strided_slice %12 {offsets = [0, 0], sizes = [1, 32], strides = [1, 1]} : vector<10x64xf32> to vector<1x32xf32>
    %14 = vector.extract_strided_slice %12 {offsets = [1, 0], sizes = [1, 32], strides = [1, 1]} : vector<10x64xf32> to vector<1x32xf32>
    %15 = vector.extract_strided_slice %12 {offsets = [2, 0], sizes = [1, 32], strides = [1, 1]} : vector<10x64xf32> to vector<1x32xf32>
    %16 = vector.extract_strided_slice %12 {offsets = [3, 0], sizes = [1, 32], strides = [1, 1]} : vector<10x64xf32> to vector<1x32xf32>
    %17 = vector.extract_strided_slice %12 {offsets = [4, 0], sizes = [1, 32], strides = [1, 1]} : vector<10x64xf32> to vector<1x32xf32>
    %18 = vector.extract_strided_slice %12 {offsets = [5, 0], sizes = [1, 32], strides = [1, 1]} : vector<10x64xf32> to vector<1x32xf32>
    %19 = vector.extract_strided_slice %12 {offsets = [6, 0], sizes = [1, 64], strides = [1, 1]} : vector<10x64xf32> to vector<1x64xf32>
    %20 = vector.extract_strided_slice %12 {offsets = [7, 0], sizes = [1, 32], strides = [1, 1]} : vector<10x64xf32> to vector<1x32xf32>
    %21 = vector.extract_strided_slice %12 {offsets = [8, 0], sizes = [1, 32], strides = [1, 1]} : vector<10x64xf32> to vector<1x32xf32>
    %22 = vector.extract_strided_slice %12 {offsets = [9, 0], sizes = [1, 32], strides = [1, 1]} : vector<10x64xf32> to vector<1x32xf32>
    %23 = arith.index_cast %c0_i32 : i32 to index
    %c0_10 = arith.constant 0 : index
    %c0_11 = arith.constant 0 : index
    %24 = vector.load %arg2[%23, %c0_10, %c0_11] : memref<2x32x32xbf16, #tpu.memory_space<vmem>>, vector<1x32x32xbf16>
    %25 = vector.shape_cast %24 : vector<1x32x32xbf16> to vector<32x32xbf16>
    %cst_12 = arith.constant dense<0.000000e+00> : vector<16x32xf32>
    %26 = tpu.matmul %9, %25, %cst_12 {dimension_numbers = #tpu.dot_dimension_numbers<[1], [0], [0], [1], [0, 0, 1, 1], [], []>} : vector<16x32xbf16>, vector<32x32xbf16>, vector<16x32xf32> -> vector<16x32xf32>
    %27 = vector.broadcast %13 : vector<1x32xf32> to vector<16x32xf32>
    %28 = arith.addf %26, %27 : vector<16x32xf32>
    %29 = arith.index_cast %c0_i32 : i32 to index
    %c0_13 = arith.constant 0 : index
    %c0_14 = arith.constant 0 : index
    %30 = vector.load %arg3[%29, %c0_13, %c0_14] : memref<2x32x32xbf16, #tpu.memory_space<vmem>>, vector<1x32x32xbf16>
    %31 = vector.shape_cast %30 : vector<1x32x32xbf16> to vector<32x32xbf16>
    %cst_15 = arith.constant dense<0.000000e+00> : vector<16x32xf32>
    %32 = tpu.matmul %9, %31, %cst_15 {dimension_numbers = #tpu.dot_dimension_numbers<[1], [0], [0], [1], [0, 0, 1, 1], [], []>} : vector<16x32xbf16>, vector<32x32xbf16>, vector<16x32xf32> -> vector<16x32xf32>
    %33 = vector.broadcast %14 : vector<1x32xf32> to vector<16x32xf32>
    %34 = arith.addf %32, %33 : vector<16x32xf32>
    %35 = arith.index_cast %c0_i32 : i32 to index
    %c0_16 = arith.constant 0 : index
    %c0_17 = arith.constant 0 : index
    %36 = vector.load %arg4[%35, %c0_16, %c0_17] : memref<2x32x32xbf16, #tpu.memory_space<vmem>>, vector<1x32x32xbf16>
    %37 = vector.shape_cast %36 : vector<1x32x32xbf16> to vector<32x32xbf16>
    %cst_18 = arith.constant dense<0.000000e+00> : vector<16x32xf32>
    %38 = tpu.matmul %9, %37, %cst_18 {dimension_numbers = #tpu.dot_dimension_numbers<[1], [0], [0], [1], [0, 0, 1, 1], [], []>} : vector<16x32xbf16>, vector<32x32xbf16>, vector<16x32xf32> -> vector<16x32xf32>
    %39 = vector.broadcast %15 : vector<1x32xf32> to vector<16x32xf32>
    %40 = arith.addf %38, %39 : vector<16x32xf32>
    %41 = vector.shape_cast %28 : vector<16x32xf32> to vector<2x8x32xf32>
    %42 = arith.truncf %41 : vector<2x8x32xf32> to vector<2x8x32xbf16>
    %43 = vector.shape_cast %34 : vector<16x32xf32> to vector<2x8x32xf32>
    %44 = arith.truncf %43 : vector<2x8x32xf32> to vector<2x8x32xbf16>
    %45 = vector.shape_cast %40 : vector<16x32xf32> to vector<2x8x32xf32>
    %46 = arith.truncf %45 : vector<2x8x32xf32> to vector<2x8x32xbf16>
    %47 = vector.extract_strided_slice %42 {offsets = [0, 0, 0], sizes = [2, 8, 8], strides = [1, 1, 1]} : vector<2x8x32xbf16> to vector<2x8x8xbf16>
    %48 = vector.extract_strided_slice %44 {offsets = [0, 0, 0], sizes = [2, 8, 8], strides = [1, 1, 1]} : vector<2x8x32xbf16> to vector<2x8x8xbf16>
    "tpu.trace_start"() <{level = 10 : i32, message = "bqd,bkd->bqk"}> : () -> ()
    %cst_19 = arith.constant dense<0.000000e+00> : vector<2x8x8xf32>
    %49 = tpu.matmul %47, %48, %cst_19 {dimension_numbers = #tpu.dot_dimension_numbers<[2], [2], [1], [1], [0, 0, 0, 1, 1, 1], [0], [0]>} : vector<2x8x8xbf16>, vector<2x8x8xbf16>, vector<2x8x8xf32> -> vector<2x8x8xf32>
    "tpu.trace_stop"() : () -> ()
    %50 = vector.broadcast %5 : vector<2x1x8xf32> to vector<2x8x8xf32>
    %51 = arith.addf %49, %50 : vector<2x8x8xf32>
    %cst_20 = arith.constant dense<0xFF800000> : vector<2x8xf32>
    %52 = vector.multi_reduction <maximumf>, %51, %cst_20 [2] : vector<2x8x8xf32> to vector<2x8xf32>
    %53 = vector.shape_cast %52 : vector<2x8xf32> to vector<2x8x1xf32>
    %54 = vector.broadcast %53 : vector<2x8x1xf32> to vector<2x8x8xf32>
    %55 = arith.subf %51, %54 : vector<2x8x8xf32>
    %56 = math.exp %55 : vector<2x8x8xf32>
    %cst_21 = arith.constant dense<0.000000e+00> : vector<2x8xf32>
    %57 = vector.multi_reduction <add>, %56, %cst_21 [2] : vector<2x8x8xf32> to vector<2x8xf32>
    %58 = vector.shape_cast %57 : vector<2x8xf32> to vector<2x8x1xf32>
    %59 = tpu.reciprocal %58 {approx = true} : vector<2x8x1xf32> -> vector<2x8x1xf32>
    %60 = vector.broadcast %59 : vector<2x8x1xf32> to vector<2x8x8xf32>
    %61 = arith.mulf %56, %60 : vector<2x8x8xf32>
    %62 = arith.truncf %61 : vector<2x8x8xf32> to vector<2x8x8xbf16>
    %63 = vector.extract_strided_slice %46 {offsets = [0, 0, 0], sizes = [2, 8, 8], strides = [1, 1, 1]} : vector<2x8x32xbf16> to vector<2x8x8xbf16>
    "tpu.trace_start"() <{level = 10 : i32, message = "bqk,bkd->bqd"}> : () -> ()
    %cst_22 = arith.constant dense<0.000000e+00> : vector<2x8x8xf32>
    %64 = tpu.matmul %62, %63, %cst_22 {dimension_numbers = #tpu.dot_dimension_numbers<[2], [1], [1], [2], [0, 0, 0, 1, 1, 2], [0], [0]>} : vector<2x8x8xbf16>, vector<2x8x8xbf16>, vector<2x8x8xf32> -> vector<2x8x8xf32>
    "tpu.trace_stop"() : () -> ()
    %65 = vector.extract_strided_slice %42 {offsets = [0, 0, 8], sizes = [2, 8, 8], strides = [1, 1, 1]} : vector<2x8x32xbf16> to vector<2x8x8xbf16>
    %66 = vector.extract_strided_slice %44 {offsets = [0, 0, 8], sizes = [2, 8, 8], strides = [1, 1, 1]} : vector<2x8x32xbf16> to vector<2x8x8xbf16>
    "tpu.trace_start"() <{level = 10 : i32, message = "bqd,bkd->bqk"}> : () -> ()
    %cst_23 = arith.constant dense<0.000000e+00> : vector<2x8x8xf32>
    %67 = tpu.matmul %65, %66, %cst_23 {dimension_numbers = #tpu.dot_dimension_numbers<[2], [2], [1], [1], [0, 0, 0, 1, 1, 1], [0], [0]>} : vector<2x8x8xbf16>, vector<2x8x8xbf16>, vector<2x8x8xf32> -> vector<2x8x8xf32>
    "tpu.trace_stop"() : () -> ()
    %68 = vector.broadcast %5 : vector<2x1x8xf32> to vector<2x8x8xf32>
    %69 = arith.addf %67, %68 : vector<2x8x8xf32>
    %cst_24 = arith.constant dense<0xFF800000> : vector<2x8xf32>
    %70 = vector.multi_reduction <maximumf>, %69, %cst_24 [2] : vector<2x8x8xf32> to vector<2x8xf32>
    %71 = vector.shape_cast %70 : vector<2x8xf32> to vector<2x8x1xf32>
    %72 = vector.broadcast %71 : vector<2x8x1xf32> to vector<2x8x8xf32>
    %73 = arith.subf %69, %72 : vector<2x8x8xf32>
    %74 = math.exp %73 : vector<2x8x8xf32>
    %cst_25 = arith.constant dense<0.000000e+00> : vector<2x8xf32>
    %75 = vector.multi_reduction <add>, %74, %cst_25 [2] : vector<2x8x8xf32> to vector<2x8xf32>
    %76 = vector.shape_cast %75 : vector<2x8xf32> to vector<2x8x1xf32>
    %77 = tpu.reciprocal %76 {approx = true} : vector<2x8x1xf32> -> vector<2x8x1xf32>
    %78 = vector.broadcast %77 : vector<2x8x1xf32> to vector<2x8x8xf32>
    %79 = arith.mulf %74, %78 : vector<2x8x8xf32>
    %80 = arith.truncf %79 : vector<2x8x8xf32> to vector<2x8x8xbf16>
    %81 = vector.extract_strided_slice %46 {offsets = [0, 0, 8], sizes = [2, 8, 8], strides = [1, 1, 1]} : vector<2x8x32xbf16> to vector<2x8x8xbf16>
    "tpu.trace_start"() <{level = 10 : i32, message = "bqk,bkd->bqd"}> : () -> ()
    %cst_26 = arith.constant dense<0.000000e+00> : vector<2x8x8xf32>
    %82 = tpu.matmul %80, %81, %cst_26 {dimension_numbers = #tpu.dot_dimension_numbers<[2], [1], [1], [2], [0, 0, 0, 1, 1, 2], [0], [0]>} : vector<2x8x8xbf16>, vector<2x8x8xbf16>, vector<2x8x8xf32> -> vector<2x8x8xf32>
    "tpu.trace_stop"() : () -> ()
    %83 = vector.extract_strided_slice %42 {offsets = [0, 0, 16], sizes = [2, 8, 8], strides = [1, 1, 1]} : vector<2x8x32xbf16> to vector<2x8x8xbf16>
    %84 = vector.extract_strided_slice %44 {offsets = [0, 0, 16], sizes = [2, 8, 8], strides = [1, 1, 1]} : vector<2x8x32xbf16> to vector<2x8x8xbf16>
    "tpu.trace_start"() <{level = 10 : i32, message = "bqd,bkd->bqk"}> : () -> ()
    %cst_27 = arith.constant dense<0.000000e+00> : vector<2x8x8xf32>
    %85 = tpu.matmul %83, %84, %cst_27 {dimension_numbers = #tpu.dot_dimension_numbers<[2], [2], [1], [1], [0, 0, 0, 1, 1, 1], [0], [0]>} : vector<2x8x8xbf16>, vector<2x8x8xbf16>, vector<2x8x8xf32> -> vector<2x8x8xf32>
    "tpu.trace_stop"() : () -> ()
    %86 = vector.broadcast %5 : vector<2x1x8xf32> to vector<2x8x8xf32>
    %87 = arith.addf %85, %86 : vector<2x8x8xf32>
    %cst_28 = arith.constant dense<0xFF800000> : vector<2x8xf32>
    %88 = vector.multi_reduction <maximumf>, %87, %cst_28 [2] : vector<2x8x8xf32> to vector<2x8xf32>
    %89 = vector.shape_cast %88 : vector<2x8xf32> to vector<2x8x1xf32>
    %90 = vector.broadcast %89 : vector<2x8x1xf32> to vector<2x8x8xf32>
    %91 = arith.subf %87, %90 : vector<2x8x8xf32>
    %92 = math.exp %91 : vector<2x8x8xf32>
    %cst_29 = arith.constant dense<0.000000e+00> : vector<2x8xf32>
    %93 = vector.multi_reduction <add>, %92, %cst_29 [2] : vector<2x8x8xf32> to vector<2x8xf32>
    %94 = vector.shape_cast %93 : vector<2x8xf32> to vector<2x8x1xf32>
    %95 = tpu.reciprocal %94 {approx = true} : vector<2x8x1xf32> -> vector<2x8x1xf32>
    %96 = vector.broadcast %95 : vector<2x8x1xf32> to vector<2x8x8xf32>
    %97 = arith.mulf %92, %96 : vector<2x8x8xf32>
    %98 = arith.truncf %97 : vector<2x8x8xf32> to vector<2x8x8xbf16>
    %99 = vector.extract_strided_slice %46 {offsets = [0, 0, 16], sizes = [2, 8, 8], strides = [1, 1, 1]} : vector<2x8x32xbf16> to vector<2x8x8xbf16>
    "tpu.trace_start"() <{level = 10 : i32, message = "bqk,bkd->bqd"}> : () -> ()
    %cst_30 = arith.constant dense<0.000000e+00> : vector<2x8x8xf32>
    %100 = tpu.matmul %98, %99, %cst_30 {dimension_numbers = #tpu.dot_dimension_numbers<[2], [1], [1], [2], [0, 0, 0, 1, 1, 2], [0], [0]>} : vector<2x8x8xbf16>, vector<2x8x8xbf16>, vector<2x8x8xf32> -> vector<2x8x8xf32>
    "tpu.trace_stop"() : () -> ()
    %101 = vector.extract_strided_slice %42 {offsets = [0, 0, 24], sizes = [2, 8, 8], strides = [1, 1, 1]} : vector<2x8x32xbf16> to vector<2x8x8xbf16>
    %102 = vector.extract_strided_slice %44 {offsets = [0, 0, 24], sizes = [2, 8, 8], strides = [1, 1, 1]} : vector<2x8x32xbf16> to vector<2x8x8xbf16>
    "tpu.trace_start"() <{level = 10 : i32, message = "bqd,bkd->bqk"}> : () -> ()
    %cst_31 = arith.constant dense<0.000000e+00> : vector<2x8x8xf32>
    %103 = tpu.matmul %101, %102, %cst_31 {dimension_numbers = #tpu.dot_dimension_numbers<[2], [2], [1], [1], [0, 0, 0, 1, 1, 1], [0], [0]>} : vector<2x8x8xbf16>, vector<2x8x8xbf16>, vector<2x8x8xf32> -> vector<2x8x8xf32>
    "tpu.trace_stop"() : () -> ()
    %104 = vector.broadcast %5 : vector<2x1x8xf32> to vector<2x8x8xf32>
    %105 = arith.addf %103, %104 : vector<2x8x8xf32>
    %cst_32 = arith.constant dense<0xFF800000> : vector<2x8xf32>
    %106 = vector.multi_reduction <maximumf>, %105, %cst_32 [2] : vector<2x8x8xf32> to vector<2x8xf32>
    %107 = vector.shape_cast %106 : vector<2x8xf32> to vector<2x8x1xf32>
    %108 = vector.broadcast %107 : vector<2x8x1xf32> to vector<2x8x8xf32>
    %109 = arith.subf %105, %108 : vector<2x8x8xf32>
    %110 = math.exp %109 : vector<2x8x8xf32>
    %cst_33 = arith.constant dense<0.000000e+00> : vector<2x8xf32>
    %111 = vector.multi_reduction <add>, %110, %cst_33 [2] : vector<2x8x8xf32> to vector<2x8xf32>
    %112 = vector.shape_cast %111 : vector<2x8xf32> to vector<2x8x1xf32>
    %113 = tpu.reciprocal %112 {approx = true} : vector<2x8x1xf32> -> vector<2x8x1xf32>
    %114 = vector.broadcast %113 : vector<2x8x1xf32> to vector<2x8x8xf32>
    %115 = arith.mulf %110, %114 : vector<2x8x8xf32>
    %116 = arith.truncf %115 : vector<2x8x8xf32> to vector<2x8x8xbf16>
    %117 = vector.extract_strided_slice %46 {offsets = [0, 0, 24], sizes = [2, 8, 8], strides = [1, 1, 1]} : vector<2x8x32xbf16> to vector<2x8x8xbf16>
    "tpu.trace_start"() <{level = 10 : i32, message = "bqk,bkd->bqd"}> : () -> ()
    %cst_34 = arith.constant dense<0.000000e+00> : vector<2x8x8xf32>
    %118 = tpu.matmul %116, %117, %cst_34 {dimension_numbers = #tpu.dot_dimension_numbers<[2], [1], [1], [2], [0, 0, 0, 1, 1, 2], [0], [0]>} : vector<2x8x8xbf16>, vector<2x8x8xbf16>, vector<2x8x8xf32> -> vector<2x8x8xf32>
    "tpu.trace_stop"() : () -> ()
    %119 = tpu.concatenate %64, %82, %100, %118 in 2 : vector<2x8x8xf32>, vector<2x8x8xf32>, vector<2x8x8xf32>, vector<2x8x8xf32> -> vector<2x8x32xf32>
    %120 = vector.shape_cast %119 : vector<2x8x32xf32> to vector<16x32xf32>
    %121 = arith.truncf %120 : vector<16x32xf32> to vector<16x32xbf16>
    %122 = arith.index_cast %c0_i32 : i32 to index
    %c0_35 = arith.constant 0 : index
    %c0_36 = arith.constant 0 : index
    %123 = vector.load %arg5[%122, %c0_35, %c0_36] : memref<2x32x32xbf16, #tpu.memory_space<vmem>>, vector<1x32x32xbf16>
    %124 = vector.shape_cast %123 : vector<1x32x32xbf16> to vector<32x32xbf16>
    %cst_37 = arith.constant dense<0.000000e+00> : vector<16x32xf32>
    %125 = tpu.matmul %121, %124, %cst_37 {dimension_numbers = #tpu.dot_dimension_numbers<[1], [0], [0], [1], [0, 0, 1, 1], [], []>} : vector<16x32xbf16>, vector<32x32xbf16>, vector<16x32xf32> -> vector<16x32xf32>
    %126 = vector.broadcast %16 : vector<1x32xf32> to vector<16x32xf32>
    %127 = arith.addf %125, %126 : vector<16x32xf32>
    %128 = arith.addf %8, %127 : vector<16x32xf32>
    %cst_38 = arith.constant dense<0.000000e+00> : vector<16xf32>
    %129 = vector.multi_reduction <add>, %128, %cst_38 [1] : vector<16x32xf32> to vector<16xf32>
    %130 = vector.shape_cast %129 : vector<16xf32> to vector<16x1xf32>
    %cst_39 = arith.constant 3.200000e+01 : f32
    %131 = vector.broadcast %cst_39 : f32 to vector<16x1xf32>
    %132 = arith.divf %130, %131 : vector<16x1xf32>
    %133 = vector.broadcast %132 : vector<16x1xf32> to vector<16x32xf32>
    %134 = arith.subf %128, %133 : vector<16x32xf32>
    %135 = arith.mulf %134, %134 : vector<16x32xf32>
    %cst_40 = arith.constant dense<0.000000e+00> : vector<16xf32>
    %136 = vector.multi_reduction <add>, %135, %cst_40 [1] : vector<16x32xf32> to vector<16xf32>
    %137 = vector.shape_cast %136 : vector<16xf32> to vector<16x1xf32>
    %cst_41 = arith.constant 3.200000e+01 : f32
    %138 = vector.broadcast %cst_41 : f32 to vector<16x1xf32>
    %139 = arith.divf %137, %138 : vector<16x1xf32>
    %140 = vector.broadcast %132 : vector<16x1xf32> to vector<16x32xf32>
    %141 = arith.subf %128, %140 : vector<16x32xf32>
    %cst_42 = arith.constant 9.99999996E-13 : f32
    %142 = vector.broadcast %cst_42 : f32 to vector<16x1xf32>
    %143 = arith.addf %139, %142 : vector<16x1xf32>
    %144 = math.rsqrt %143 : vector<16x1xf32>
    %145 = vector.broadcast %144 : vector<16x1xf32> to vector<16x32xf32>
    %146 = arith.mulf %141, %145 : vector<16x32xf32>
    %147 = vector.broadcast %17 : vector<1x32xf32> to vector<16x32xf32>
    %148 = arith.mulf %146, %147 : vector<16x32xf32>
    %149 = vector.broadcast %18 : vector<1x32xf32> to vector<16x32xf32>
    %150 = arith.addf %148, %149 : vector<16x32xf32>
    %151 = arith.truncf %150 : vector<16x32xf32> to vector<16x32xbf16>
    %152 = arith.index_cast %c0_i32 : i32 to index
    %c0_43 = arith.constant 0 : index
    %c0_44 = arith.constant 0 : index
    %153 = vector.load %arg6[%152, %c0_43, %c0_44] : memref<2x32x64xbf16, #tpu.memory_space<vmem>>, vector<1x32x64xbf16>
    %154 = vector.shape_cast %153 : vector<1x32x64xbf16> to vector<32x64xbf16>
    %cst_45 = arith.constant dense<0.000000e+00> : vector<16x64xf32>
    %155 = tpu.matmul %151, %154, %cst_45 {dimension_numbers = #tpu.dot_dimension_numbers<[1], [0], [0], [1], [0, 0, 1, 1], [], []>} : vector<16x32xbf16>, vector<32x64xbf16>, vector<16x64xf32> -> vector<16x64xf32>
    %156 = vector.broadcast %19 : vector<1x64xf32> to vector<16x64xf32>
    %157 = arith.addf %155, %156 : vector<16x64xf32>
    %158 = arith.mulf %157, %157 : vector<16x64xf32>
    %159 = arith.mulf %157, %158 : vector<16x64xf32>
    %cst_46 = arith.constant 4.471500e-02 : f32
    %160 = vector.broadcast %cst_46 : f32 to vector<16x64xf32>
    %161 = arith.mulf %160, %159 : vector<16x64xf32>
    %162 = arith.addf %157, %161 : vector<16x64xf32>
    %cst_47 = arith.constant 0.797884583 : f32
    %163 = vector.broadcast %cst_47 : f32 to vector<16x64xf32>
    %164 = arith.mulf %163, %162 : vector<16x64xf32>
    %165 = math.tanh %164 : vector<16x64xf32>
    %cst_48 = arith.constant 1.000000e+00 : f32
    %166 = vector.broadcast %cst_48 : f32 to vector<16x64xf32>
    %167 = arith.addf %166, %165 : vector<16x64xf32>
    %cst_49 = arith.constant 5.000000e-01 : f32
    %168 = vector.broadcast %cst_49 : f32 to vector<16x64xf32>
    %169 = arith.mulf %168, %167 : vector<16x64xf32>
    %170 = arith.mulf %157, %169 : vector<16x64xf32>
    %171 = arith.truncf %170 : vector<16x64xf32> to vector<16x64xbf16>
    %172 = arith.index_cast %c0_i32 : i32 to index
    %c0_50 = arith.constant 0 : index
    %c0_51 = arith.constant 0 : index
    %173 = vector.load %arg7[%172, %c0_50, %c0_51] : memref<2x64x32xbf16, #tpu.memory_space<vmem>>, vector<1x64x32xbf16>
    %174 = vector.shape_cast %173 : vector<1x64x32xbf16> to vector<64x32xbf16>
    %cst_52 = arith.constant dense<0.000000e+00> : vector<16x32xf32>
    %175 = tpu.matmul %171, %174, %cst_52 {dimension_numbers = #tpu.dot_dimension_numbers<[1], [0], [0], [1], [0, 0, 1, 1], [], []>} : vector<16x64xbf16>, vector<64x32xbf16>, vector<16x32xf32> -> vector<16x32xf32>
    %176 = vector.broadcast %20 : vector<1x32xf32> to vector<16x32xf32>
    %177 = arith.addf %175, %176 : vector<16x32xf32>
    %178 = arith.addf %150, %177 : vector<16x32xf32>
    %cst_53 = arith.constant dense<0.000000e+00> : vector<16xf32>
    %179 = vector.multi_reduction <add>, %178, %cst_53 [1] : vector<16x32xf32> to vector<16xf32>
    %180 = vector.shape_cast %179 : vector<16xf32> to vector<16x1xf32>
    %cst_54 = arith.constant 3.200000e+01 : f32
    %181 = vector.broadcast %cst_54 : f32 to vector<16x1xf32>
    %182 = arith.divf %180, %181 : vector<16x1xf32>
    %183 = vector.broadcast %182 : vector<16x1xf32> to vector<16x32xf32>
    %184 = arith.subf %178, %183 : vector<16x32xf32>
    %185 = arith.mulf %184, %184 : vector<16x32xf32>
    %cst_55 = arith.constant dense<0.000000e+00> : vector<16xf32>
    %186 = vector.multi_reduction <add>, %185, %cst_55 [1] : vector<16x32xf32> to vector<16xf32>
    %187 = vector.shape_cast %186 : vector<16xf32> to vector<16x1xf32>
    %cst_56 = arith.constant 3.200000e+01 : f32
    %188 = vector.broadcast %cst_56 : f32 to vector<16x1xf32>
    %189 = arith.divf %187, %188 : vector<16x1xf32>
    %190 = vector.broadcast %182 : vector<16x1xf32> to vector<16x32xf32>
    %191 = arith.subf %178, %190 : vector<16x32xf32>
    %cst_57 = arith.constant 9.99999996E-13 : f32
    %192 = vector.broadcast %cst_57 : f32 to vector<16x1xf32>
    %193 = arith.addf %189, %192 : vector<16x1xf32>
    %194 = math.rsqrt %193 : vector<16x1xf32>
    %195 = vector.broadcast %194 : vector<16x1xf32> to vector<16x32xf32>
    %196 = arith.mulf %191, %195 : vector<16x32xf32>
    %197 = vector.broadcast %21 : vector<1x32xf32> to vector<16x32xf32>
    %198 = arith.mulf %196, %197 : vector<16x32xf32>
    %199 = vector.broadcast %22 : vector<1x32xf32> to vector<16x32xf32>
    %200 = arith.addf %198, %199 : vector<16x32xf32>
    %c0_58 = arith.constant 0 : index
    %c0_59 = arith.constant 0 : index
    %201 = vector.load %arg12[%c0_58, %c0_59] : memref<16x32xf32, #tpu.memory_space<vmem>>, vector<16x32xf32>
    tpu.vector_store %arg12[%c0_58, %c0_59], %200 {strides = array<i32>} : memref<16x32xf32, #tpu.memory_space<vmem>>, vector<16x32xf32>,
    %c1_i32 = arith.constant 1 : i32
    %c0_60 = arith.constant 0 : index
    %c0_61 = arith.constant 0 : index
    %202 = vector.load %arg12[%c0_60, %c0_61] : memref<16x32xf32, #tpu.memory_space<vmem>>, vector<16x32xf32>
    %203 = arith.truncf %202 : vector<16x32xf32> to vector<16x32xbf16>
    %204 = arith.index_cast %c1_i32 : i32 to index
    %c0_62 = arith.constant 0 : index
    %c0_63 = arith.constant 0 : index
    %205 = vector.load %arg8[%204, %c0_62, %c0_63] : memref<2x10x64xf32, #tpu.memory_space<vmem>>, vector<1x10x64xf32>
    %206 = vector.shape_cast %205 : vector<1x10x64xf32> to vector<10x64xf32>
    %207 = vector.extract_strided_slice %206 {offsets = [0, 0], sizes = [1, 32], strides = [1, 1]} : vector<10x64xf32> to vector<1x32xf32>
    %208 = vector.extract_strided_slice %206 {offsets = [1, 0], sizes = [1, 32], strides = [1, 1]} : vector<10x64xf32> to vector<1x32xf32>
    %209 = vector.extract_strided_slice %206 {offsets = [2, 0], sizes = [1, 32], strides = [1, 1]} : vector<10x64xf32> to vector<1x32xf32>
    %210 = vector.extract_strided_slice %206 {offsets = [3, 0], sizes = [1, 32], strides = [1, 1]} : vector<10x64xf32> to vector<1x32xf32>
    %211 = vector.extract_strided_slice %206 {offsets = [4, 0], sizes = [1, 32], strides = [1, 1]} : vector<10x64xf32> to vector<1x32xf32>
    %212 = vector.extract_strided_slice %206 {offsets = [5, 0], sizes = [1, 32], strides = [1, 1]} : vector<10x64xf32> to vector<1x32xf32>
    %213 = vector.extract_strided_slice %206 {offsets = [6, 0], sizes = [1, 64], strides = [1, 1]} : vector<10x64xf32> to vector<1x64xf32>
    %214 = vector.extract_strided_slice %206 {offsets = [7, 0], sizes = [1, 32], strides = [1, 1]} : vector<10x64xf32> to vector<1x32xf32>
    %215 = vector.extract_strided_slice %206 {offsets = [8, 0], sizes = [1, 32], strides = [1, 1]} : vector<10x64xf32> to vector<1x32xf32>
    %216 = vector.extract_strided_slice %206 {offsets = [9, 0], sizes = [1, 32], strides = [1, 1]} : vector<10x64xf32> to vector<1x32xf32>
    %217 = arith.index_cast %c1_i32 : i32 to index
    %c0_64 = arith.constant 0 : index
    %c0_65 = arith.constant 0 : index
    %218 = vector.load %arg2[%217, %c0_64, %c0_65] : memref<2x32x32xbf16, #tpu.memory_space<vmem>>, vector<1x32x32xbf16>
    %219 = vector.shape_cast %218 : vector<1x32x32xbf16> to vector<32x32xbf16>
    %cst_66 = arith.constant dense<0.000000e+00> : vector<16x32xf32>
    %220 = tpu.matmul %203, %219, %cst_66 {dimension_numbers = #tpu.dot_dimension_numbers<[1], [0], [0], [1], [0, 0, 1, 1], [], []>} : vector<16x32xbf16>, vector<32x32xbf16>, vector<16x32xf32> -> vector<16x32xf32>
    %221 = vector.broadcast %207 : vector<1x32xf32> to vector<16x32xf32>
    %222 = arith.addf %220, %221 : vector<16x32xf32>
    %223 = arith.index_cast %c1_i32 : i32 to index
    %c0_67 = arith.constant 0 : index
    %c0_68 = arith.constant 0 : index
    %224 = vector.load %arg3[%223, %c0_67, %c0_68] : memref<2x32x32xbf16, #tpu.memory_space<vmem>>, vector<1x32x32xbf16>
    %225 = vector.shape_cast %224 : vector<1x32x32xbf16> to vector<32x32xbf16>
    %cst_69 = arith.constant dense<0.000000e+00> : vector<16x32xf32>
    %226 = tpu.matmul %203, %225, %cst_69 {dimension_numbers = #tpu.dot_dimension_numbers<[1], [0], [0], [1], [0, 0, 1, 1], [], []>} : vector<16x32xbf16>, vector<32x32xbf16>, vector<16x32xf32> -> vector<16x32xf32>
    %227 = vector.broadcast %208 : vector<1x32xf32> to vector<16x32xf32>
    %228 = arith.addf %226, %227 : vector<16x32xf32>
    %229 = arith.index_cast %c1_i32 : i32 to index
    %c0_70 = arith.constant 0 : index
    %c0_71 = arith.constant 0 : index
    %230 = vector.load %arg4[%229, %c0_70, %c0_71] : memref<2x32x32xbf16, #tpu.memory_space<vmem>>, vector<1x32x32xbf16>
    %231 = vector.shape_cast %230 : vector<1x32x32xbf16> to vector<32x32xbf16>
    %cst_72 = arith.constant dense<0.000000e+00> : vector<16x32xf32>
    %232 = tpu.matmul %203, %231, %cst_72 {dimension_numbers = #tpu.dot_dimension_numbers<[1], [0], [0], [1], [0, 0, 1, 1], [], []>} : vector<16x32xbf16>, vector<32x32xbf16>, vector<16x32xf32> -> vector<16x32xf32>
    %233 = vector.broadcast %209 : vector<1x32xf32> to vector<16x32xf32>
    %234 = arith.addf %232, %233 : vector<16x32xf32>
    %235 = vector.shape_cast %222 : vector<16x32xf32> to vector<2x8x32xf32>
    %236 = arith.truncf %235 : vector<2x8x32xf32> to vector<2x8x32xbf16>
    %237 = vector.shape_cast %228 : vector<16x32xf32> to vector<2x8x32xf32>
    %238 = arith.truncf %237 : vector<2x8x32xf32> to vector<2x8x32xbf16>
    %239 = vector.shape_cast %234 : vector<16x32xf32> to vector<2x8x32xf32>
    %240 = arith.truncf %239 : vector<2x8x32xf32> to vector<2x8x32xbf16>
    %241 = vector.extract_strided_slice %236 {offsets = [0, 0, 0], sizes = [2, 8, 8], strides = [1, 1, 1]} : vector<2x8x32xbf16> to vector<2x8x8xbf16>
    %242 = vector.extract_strided_slice %238 {offsets = [0, 0, 0], sizes = [2, 8, 8], strides = [1, 1, 1]} : vector<2x8x32xbf16> to vector<2x8x8xbf16>
    "tpu.trace_start"() <{level = 10 : i32, message = "bqd,bkd->bqk"}> : () -> ()
    %cst_73 = arith.constant dense<0.000000e+00> : vector<2x8x8xf32>
    %243 = tpu.matmul %241, %242, %cst_73 {dimension_numbers = #tpu.dot_dimension_numbers<[2], [2], [1], [1], [0, 0, 0, 1, 1, 1], [0], [0]>} : vector<2x8x8xbf16>, vector<2x8x8xbf16>, vector<2x8x8xf32> -> vector<2x8x8xf32>
    "tpu.trace_stop"() : () -> ()
    %244 = vector.broadcast %5 : vector<2x1x8xf32> to vector<2x8x8xf32>
    %245 = arith.addf %243, %244 : vector<2x8x8xf32>
    %cst_74 = arith.constant dense<0xFF800000> : vector<2x8xf32>
    %246 = vector.multi_reduction <maximumf>, %245, %cst_74 [2] : vector<2x8x8xf32> to vector<2x8xf32>
    %247 = vector.shape_cast %246 : vector<2x8xf32> to vector<2x8x1xf32>
    %248 = vector.broadcast %247 : vector<2x8x1xf32> to vector<2x8x8xf32>
    %249 = arith.subf %245, %248 : vector<2x8x8xf32>
    %250 = math.exp %249 : vector<2x8x8xf32>
    %cst_75 = arith.constant dense<0.000000e+00> : vector<2x8xf32>
    %251 = vector.multi_reduction <add>, %250, %cst_75 [2] : vector<2x8x8xf32> to vector<2x8xf32>
    %252 = vector.shape_cast %251 : vector<2x8xf32> to vector<2x8x1xf32>
    %253 = tpu.reciprocal %252 {approx = true} : vector<2x8x1xf32> -> vector<2x8x1xf32>
    %254 = vector.broadcast %253 : vector<2x8x1xf32> to vector<2x8x8xf32>
    %255 = arith.mulf %250, %254 : vector<2x8x8xf32>
    %256 = arith.truncf %255 : vector<2x8x8xf32> to vector<2x8x8xbf16>
    %257 = vector.extract_strided_slice %240 {offsets = [0, 0, 0], sizes = [2, 8, 8], strides = [1, 1, 1]} : vector<2x8x32xbf16> to vector<2x8x8xbf16>
    "tpu.trace_start"() <{level = 10 : i32, message = "bqk,bkd->bqd"}> : () -> ()
    %cst_76 = arith.constant dense<0.000000e+00> : vector<2x8x8xf32>
    %258 = tpu.matmul %256, %257, %cst_76 {dimension_numbers = #tpu.dot_dimension_numbers<[2], [1], [1], [2], [0, 0, 0, 1, 1, 2], [0], [0]>} : vector<2x8x8xbf16>, vector<2x8x8xbf16>, vector<2x8x8xf32> -> vector<2x8x8xf32>
    "tpu.trace_stop"() : () -> ()
    %259 = vector.extract_strided_slice %236 {offsets = [0, 0, 8], sizes = [2, 8, 8], strides = [1, 1, 1]} : vector<2x8x32xbf16> to vector<2x8x8xbf16>
    %260 = vector.extract_strided_slice %238 {offsets = [0, 0, 8], sizes = [2, 8, 8], strides = [1, 1, 1]} : vector<2x8x32xbf16> to vector<2x8x8xbf16>
    "tpu.trace_start"() <{level = 10 : i32, message = "bqd,bkd->bqk"}> : () -> ()
    %cst_77 = arith.constant dense<0.000000e+00> : vector<2x8x8xf32>
    %261 = tpu.matmul %259, %260, %cst_77 {dimension_numbers = #tpu.dot_dimension_numbers<[2], [2], [1], [1], [0, 0, 0, 1, 1, 1], [0], [0]>} : vector<2x8x8xbf16>, vector<2x8x8xbf16>, vector<2x8x8xf32> -> vector<2x8x8xf32>
    "tpu.trace_stop"() : () -> ()
    %262 = vector.broadcast %5 : vector<2x1x8xf32> to vector<2x8x8xf32>
    %263 = arith.addf %261, %262 : vector<2x8x8xf32>
    %cst_78 = arith.constant dense<0xFF800000> : vector<2x8xf32>
    %264 = vector.multi_reduction <maximumf>, %263, %cst_78 [2] : vector<2x8x8xf32> to vector<2x8xf32>
    %265 = vector.shape_cast %264 : vector<2x8xf32> to vector<2x8x1xf32>
    %266 = vector.broadcast %265 : vector<2x8x1xf32> to vector<2x8x8xf32>
    %267 = arith.subf %263, %266 : vector<2x8x8xf32>
    %268 = math.exp %267 : vector<2x8x8xf32>
    %cst_79 = arith.constant dense<0.000000e+00> : vector<2x8xf32>
    %269 = vector.multi_reduction <add>, %268, %cst_79 [2] : vector<2x8x8xf32> to vector<2x8xf32>
    %270 = vector.shape_cast %269 : vector<2x8xf32> to vector<2x8x1xf32>
    %271 = tpu.reciprocal %270 {approx = true} : vector<2x8x1xf32> -> vector<2x8x1xf32>
    %272 = vector.broadcast %271 : vector<2x8x1xf32> to vector<2x8x8xf32>
    %273 = arith.mulf %268, %272 : vector<2x8x8xf32>
    %274 = arith.truncf %273 : vector<2x8x8xf32> to vector<2x8x8xbf16>
    %275 = vector.extract_strided_slice %240 {offsets = [0, 0, 8], sizes = [2, 8, 8], strides = [1, 1, 1]} : vector<2x8x32xbf16> to vector<2x8x8xbf16>
    "tpu.trace_start"() <{level = 10 : i32, message = "bqk,bkd->bqd"}> : () -> ()
    %cst_80 = arith.constant dense<0.000000e+00> : vector<2x8x8xf32>
    %276 = tpu.matmul %274, %275, %cst_80 {dimension_numbers = #tpu.dot_dimension_numbers<[2], [1], [1], [2], [0, 0, 0, 1, 1, 2], [0], [0]>} : vector<2x8x8xbf16>, vector<2x8x8xbf16>, vector<2x8x8xf32> -> vector<2x8x8xf32>
    "tpu.trace_stop"() : () -> ()
    %277 = vector.extract_strided_slice %236 {offsets = [0, 0, 16], sizes = [2, 8, 8], strides = [1, 1, 1]} : vector<2x8x32xbf16> to vector<2x8x8xbf16>
    %278 = vector.extract_strided_slice %238 {offsets = [0, 0, 16], sizes = [2, 8, 8], strides = [1, 1, 1]} : vector<2x8x32xbf16> to vector<2x8x8xbf16>
    "tpu.trace_start"() <{level = 10 : i32, message = "bqd,bkd->bqk"}> : () -> ()
    %cst_81 = arith.constant dense<0.000000e+00> : vector<2x8x8xf32>
    %279 = tpu.matmul %277, %278, %cst_81 {dimension_numbers = #tpu.dot_dimension_numbers<[2], [2], [1], [1], [0, 0, 0, 1, 1, 1], [0], [0]>} : vector<2x8x8xbf16>, vector<2x8x8xbf16>, vector<2x8x8xf32> -> vector<2x8x8xf32>
    "tpu.trace_stop"() : () -> ()
    %280 = vector.broadcast %5 : vector<2x1x8xf32> to vector<2x8x8xf32>
    %281 = arith.addf %279, %280 : vector<2x8x8xf32>
    %cst_82 = arith.constant dense<0xFF800000> : vector<2x8xf32>
    %282 = vector.multi_reduction <maximumf>, %281, %cst_82 [2] : vector<2x8x8xf32> to vector<2x8xf32>
    %283 = vector.shape_cast %282 : vector<2x8xf32> to vector<2x8x1xf32>
    %284 = vector.broadcast %283 : vector<2x8x1xf32> to vector<2x8x8xf32>
    %285 = arith.subf %281, %284 : vector<2x8x8xf32>
    %286 = math.exp %285 : vector<2x8x8xf32>
    %cst_83 = arith.constant dense<0.000000e+00> : vector<2x8xf32>
    %287 = vector.multi_reduction <add>, %286, %cst_83 [2] : vector<2x8x8xf32> to vector<2x8xf32>
    %288 = vector.shape_cast %287 : vector<2x8xf32> to vector<2x8x1xf32>
    %289 = tpu.reciprocal %288 {approx = true} : vector<2x8x1xf32> -> vector<2x8x1xf32>
    %290 = vector.broadcast %289 : vector<2x8x1xf32> to vector<2x8x8xf32>
    %291 = arith.mulf %286, %290 : vector<2x8x8xf32>
    %292 = arith.truncf %291 : vector<2x8x8xf32> to vector<2x8x8xbf16>
    %293 = vector.extract_strided_slice %240 {offsets = [0, 0, 16], sizes = [2, 8, 8], strides = [1, 1, 1]} : vector<2x8x32xbf16> to vector<2x8x8xbf16>
    "tpu.trace_start"() <{level = 10 : i32, message = "bqk,bkd->bqd"}> : () -> ()
    %cst_84 = arith.constant dense<0.000000e+00> : vector<2x8x8xf32>
    %294 = tpu.matmul %292, %293, %cst_84 {dimension_numbers = #tpu.dot_dimension_numbers<[2], [1], [1], [2], [0, 0, 0, 1, 1, 2], [0], [0]>} : vector<2x8x8xbf16>, vector<2x8x8xbf16>, vector<2x8x8xf32> -> vector<2x8x8xf32>
    "tpu.trace_stop"() : () -> ()
    %295 = vector.extract_strided_slice %236 {offsets = [0, 0, 24], sizes = [2, 8, 8], strides = [1, 1, 1]} : vector<2x8x32xbf16> to vector<2x8x8xbf16>
    %296 = vector.extract_strided_slice %238 {offsets = [0, 0, 24], sizes = [2, 8, 8], strides = [1, 1, 1]} : vector<2x8x32xbf16> to vector<2x8x8xbf16>
    "tpu.trace_start"() <{level = 10 : i32, message = "bqd,bkd->bqk"}> : () -> ()
    %cst_85 = arith.constant dense<0.000000e+00> : vector<2x8x8xf32>
    %297 = tpu.matmul %295, %296, %cst_85 {dimension_numbers = #tpu.dot_dimension_numbers<[2], [2], [1], [1], [0, 0, 0, 1, 1, 1], [0], [0]>} : vector<2x8x8xbf16>, vector<2x8x8xbf16>, vector<2x8x8xf32> -> vector<2x8x8xf32>
    "tpu.trace_stop"() : () -> ()
    %298 = vector.broadcast %5 : vector<2x1x8xf32> to vector<2x8x8xf32>
    %299 = arith.addf %297, %298 : vector<2x8x8xf32>
    %cst_86 = arith.constant dense<0xFF800000> : vector<2x8xf32>
    %300 = vector.multi_reduction <maximumf>, %299, %cst_86 [2] : vector<2x8x8xf32> to vector<2x8xf32>
    %301 = vector.shape_cast %300 : vector<2x8xf32> to vector<2x8x1xf32>
    %302 = vector.broadcast %301 : vector<2x8x1xf32> to vector<2x8x8xf32>
    %303 = arith.subf %299, %302 : vector<2x8x8xf32>
    %304 = math.exp %303 : vector<2x8x8xf32>
    %cst_87 = arith.constant dense<0.000000e+00> : vector<2x8xf32>
    %305 = vector.multi_reduction <add>, %304, %cst_87 [2] : vector<2x8x8xf32> to vector<2x8xf32>
    %306 = vector.shape_cast %305 : vector<2x8xf32> to vector<2x8x1xf32>
    %307 = tpu.reciprocal %306 {approx = true} : vector<2x8x1xf32> -> vector<2x8x1xf32>
    %308 = vector.broadcast %307 : vector<2x8x1xf32> to vector<2x8x8xf32>
    %309 = arith.mulf %304, %308 : vector<2x8x8xf32>
    %310 = arith.truncf %309 : vector<2x8x8xf32> to vector<2x8x8xbf16>
    %311 = vector.extract_strided_slice %240 {offsets = [0, 0, 24], sizes = [2, 8, 8], strides = [1, 1, 1]} : vector<2x8x32xbf16> to vector<2x8x8xbf16>
    "tpu.trace_start"() <{level = 10 : i32, message = "bqk,bkd->bqd"}> : () -> ()
    %cst_88 = arith.constant dense<0.000000e+00> : vector<2x8x8xf32>
    %312 = tpu.matmul %310, %311, %cst_88 {dimension_numbers = #tpu.dot_dimension_numbers<[2], [1], [1], [2], [0, 0, 0, 1, 1, 2], [0], [0]>} : vector<2x8x8xbf16>, vector<2x8x8xbf16>, vector<2x8x8xf32> -> vector<2x8x8xf32>
    "tpu.trace_stop"() : () -> ()
    %313 = tpu.concatenate %258, %276, %294, %312 in 2 : vector<2x8x8xf32>, vector<2x8x8xf32>, vector<2x8x8xf32>, vector<2x8x8xf32> -> vector<2x8x32xf32>
    %314 = vector.shape_cast %313 : vector<2x8x32xf32> to vector<16x32xf32>
    %315 = arith.truncf %314 : vector<16x32xf32> to vector<16x32xbf16>
    %316 = arith.index_cast %c1_i32 : i32 to index
    %c0_89 = arith.constant 0 : index
    %c0_90 = arith.constant 0 : index
    %317 = vector.load %arg5[%316, %c0_89, %c0_90] : memref<2x32x32xbf16, #tpu.memory_space<vmem>>, vector<1x32x32xbf16>
    %318 = vector.shape_cast %317 : vector<1x32x32xbf16> to vector<32x32xbf16>
    %cst_91 = arith.constant dense<0.000000e+00> : vector<16x32xf32>
    %319 = tpu.matmul %315, %318, %cst_91 {dimension_numbers = #tpu.dot_dimension_numbers<[1], [0], [0], [1], [0, 0, 1, 1], [], []>} : vector<16x32xbf16>, vector<32x32xbf16>, vector<16x32xf32> -> vector<16x32xf32>
    %320 = vector.broadcast %210 : vector<1x32xf32> to vector<16x32xf32>
    %321 = arith.addf %319, %320 : vector<16x32xf32>
    %322 = arith.addf %202, %321 : vector<16x32xf32>
    %cst_92 = arith.constant dense<0.000000e+00> : vector<16xf32>
    %323 = vector.multi_reduction <add>, %322, %cst_92 [1] : vector<16x32xf32> to vector<16xf32>
    %324 = vector.shape_cast %323 : vector<16xf32> to vector<16x1xf32>
    %cst_93 = arith.constant 3.200000e+01 : f32
    %325 = vector.broadcast %cst_93 : f32 to vector<16x1xf32>
    %326 = arith.divf %324, %325 : vector<16x1xf32>
    %327 = vector.broadcast %326 : vector<16x1xf32> to vector<16x32xf32>
    %328 = arith.subf %322, %327 : vector<16x32xf32>
    %329 = arith.mulf %328, %328 : vector<16x32xf32>
    %cst_94 = arith.constant dense<0.000000e+00> : vector<16xf32>
    %330 = vector.multi_reduction <add>, %329, %cst_94 [1] : vector<16x32xf32> to vector<16xf32>
    %331 = vector.shape_cast %330 : vector<16xf32> to vector<16x1xf32>
    %cst_95 = arith.constant 3.200000e+01 : f32
    %332 = vector.broadcast %cst_95 : f32 to vector<16x1xf32>
    %333 = arith.divf %331, %332 : vector<16x1xf32>
    %334 = vector.broadcast %326 : vector<16x1xf32> to vector<16x32xf32>
    %335 = arith.subf %322, %334 : vector<16x32xf32>
    %cst_96 = arith.constant 9.99999996E-13 : f32
    %336 = vector.broadcast %cst_96 : f32 to vector<16x1xf32>
    %337 = arith.addf %333, %336 : vector<16x1xf32>
    %338 = math.rsqrt %337 : vector<16x1xf32>
    %339 = vector.broadcast %338 : vector<16x1xf32> to vector<16x32xf32>
    %340 = arith.mulf %335, %339 : vector<16x32xf32>
    %341 = vector.broadcast %211 : vector<1x32xf32> to vector<16x32xf32>
    %342 = arith.mulf %340, %341 : vector<16x32xf32>
    %343 = vector.broadcast %212 : vector<1x32xf32> to vector<16x32xf32>
    %344 = arith.addf %342, %343 : vector<16x32xf32>
    %345 = arith.truncf %344 : vector<16x32xf32> to vector<16x32xbf16>
    %346 = arith.index_cast %c1_i32 : i32 to index
    %c0_97 = arith.constant 0 : index
    %c0_98 = arith.constant 0 : index
    %347 = vector.load %arg6[%346, %c0_97, %c0_98] : memref<2x32x64xbf16, #tpu.memory_space<vmem>>, vector<1x32x64xbf16>
    %348 = vector.shape_cast %347 : vector<1x32x64xbf16> to vector<32x64xbf16>
    %cst_99 = arith.constant dense<0.000000e+00> : vector<16x64xf32>
    %349 = tpu.matmul %345, %348, %cst_99 {dimension_numbers = #tpu.dot_dimension_numbers<[1], [0], [0], [1], [0, 0, 1, 1], [], []>} : vector<16x32xbf16>, vector<32x64xbf16>, vector<16x64xf32> -> vector<16x64xf32>
    %350 = vector.broadcast %213 : vector<1x64xf32> to vector<16x64xf32>
    %351 = arith.addf %349, %350 : vector<16x64xf32>
    %352 = arith.mulf %351, %351 : vector<16x64xf32>
    %353 = arith.mulf %351, %352 : vector<16x64xf32>
    %cst_100 = arith.constant 4.471500e-02 : f32
    %354 = vector.broadcast %cst_100 : f32 to vector<16x64xf32>
    %355 = arith.mulf %354, %353 : vector<16x64xf32>
    %356 = arith.addf %351, %355 : vector<16x64xf32>
    %cst_101 = arith.constant 0.797884583 : f32
    %357 = vector.broadcast %cst_101 : f32 to vector<16x64xf32>
    %358 = arith.mulf %357, %356 : vector<16x64xf32>
    %359 = math.tanh %358 : vector<16x64xf32>
    %cst_102 = arith.constant 1.000000e+00 : f32
    %360 = vector.broadcast %cst_102 : f32 to vector<16x64xf32>
    %361 = arith.addf %360, %359 : vector<16x64xf32>
    %cst_103 = arith.constant 5.000000e-01 : f32
    %362 = vector.broadcast %cst_103 : f32 to vector<16x64xf32>
    %363 = arith.mulf %362, %361 : vector<16x64xf32>
    %364 = arith.mulf %351, %363 : vector<16x64xf32>
    %365 = arith.truncf %364 : vector<16x64xf32> to vector<16x64xbf16>
    %366 = arith.index_cast %c1_i32 : i32 to index
    %c0_104 = arith.constant 0 : index
    %c0_105 = arith.constant 0 : index
    %367 = vector.load %arg7[%366, %c0_104, %c0_105] : memref<2x64x32xbf16, #tpu.memory_space<vmem>>, vector<1x64x32xbf16>
    %368 = vector.shape_cast %367 : vector<1x64x32xbf16> to vector<64x32xbf16>
    %cst_106 = arith.constant dense<0.000000e+00> : vector<16x32xf32>
    %369 = tpu.matmul %365, %368, %cst_106 {dimension_numbers = #tpu.dot_dimension_numbers<[1], [0], [0], [1], [0, 0, 1, 1], [], []>} : vector<16x64xbf16>, vector<64x32xbf16>, vector<16x32xf32> -> vector<16x32xf32>
    %370 = vector.broadcast %214 : vector<1x32xf32> to vector<16x32xf32>
    %371 = arith.addf %369, %370 : vector<16x32xf32>
    %372 = arith.addf %344, %371 : vector<16x32xf32>
    %cst_107 = arith.constant dense<0.000000e+00> : vector<16xf32>
    %373 = vector.multi_reduction <add>, %372, %cst_107 [1] : vector<16x32xf32> to vector<16xf32>
    %374 = vector.shape_cast %373 : vector<16xf32> to vector<16x1xf32>
    %cst_108 = arith.constant 3.200000e+01 : f32
    %375 = vector.broadcast %cst_108 : f32 to vector<16x1xf32>
    %376 = arith.divf %374, %375 : vector<16x1xf32>
    %377 = vector.broadcast %376 : vector<16x1xf32> to vector<16x32xf32>
    %378 = arith.subf %372, %377 : vector<16x32xf32>
    %379 = arith.mulf %378, %378 : vector<16x32xf32>
    %cst_109 = arith.constant dense<0.000000e+00> : vector<16xf32>
    %380 = vector.multi_reduction <add>, %379, %cst_109 [1] : vector<16x32xf32> to vector<16xf32>
    %381 = vector.shape_cast %380 : vector<16xf32> to vector<16x1xf32>
    %cst_110 = arith.constant 3.200000e+01 : f32
    %382 = vector.broadcast %cst_110 : f32 to vector<16x1xf32>
    %383 = arith.divf %381, %382 : vector<16x1xf32>
    %384 = vector.broadcast %376 : vector<16x1xf32> to vector<16x32xf32>
    %385 = arith.subf %372, %384 : vector<16x32xf32>
    %cst_111 = arith.constant 9.99999996E-13 : f32
    %386 = vector.broadcast %cst_111 : f32 to vector<16x1xf32>
    %387 = arith.addf %383, %386 : vector<16x1xf32>
    %388 = math.rsqrt %387 : vector<16x1xf32>
    %389 = vector.broadcast %388 : vector<16x1xf32> to vector<16x32xf32>
    %390 = arith.mulf %385, %389 : vector<16x32xf32>
    %391 = vector.broadcast %215 : vector<1x32xf32> to vector<16x32xf32>
    %392 = arith.mulf %390, %391 : vector<16x32xf32>
    %393 = vector.broadcast %216 : vector<1x32xf32> to vector<16x32xf32>
    %394 = arith.addf %392, %393 : vector<16x32xf32>
    %c0_112 = arith.constant 0 : index
    %c0_113 = arith.constant 0 : index
    %395 = vector.load %arg12[%c0_112, %c0_113] : memref<16x32xf32, #tpu.memory_space<vmem>>, vector<16x32xf32>
    tpu.vector_store %arg12[%c0_112, %c0_113], %394 {strides = array<i32>} : memref<16x32xf32, #tpu.memory_space<vmem>>, vector<16x32xf32>,
    %c2_i32 = arith.constant 2 : i32
    %c0_114 = arith.constant 0 : index
    %c0_115 = arith.constant 0 : index
    %396 = tpu.strided_load %arg12[%c0_114, %c0_115] {strides = array<i32: 8, 1>} : memref<16x32xf32, #tpu.memory_space<vmem>>, vector<2x32xf32>
    %c0_116 = arith.constant 0 : index
    %c0_117 = arith.constant 0 : index
    %397 = vector.load %arg9[%c0_116, %c0_117] : memref<32x3xf32, #tpu.memory_space<vmem>>, vector<32x3xf32>
    %cst_118 = arith.constant dense<0.000000e+00> : vector<2x3xf32>
    %398 = tpu.matmul %396, %397, %cst_118 {dimension_numbers = #tpu.dot_dimension_numbers<[1], [0], [0], [1], [0, 0, 1, 1], [], []>} : vector<2x32xf32>, vector<32x3xf32>, vector<2x3xf32> -> vector<2x3xf32>
    %c0_119 = arith.constant 0 : index
    %c0_120 = arith.constant 0 : index
    %399 = vector.load %arg10[%c0_119, %c0_120] : memref<1x3xf32, #tpu.memory_space<vmem>>, vector<1x3xf32>
    %400 = vector.broadcast %399 : vector<1x3xf32> to vector<2x3xf32>
    %401 = arith.addf %398, %400 : vector<2x3xf32>
    %c0_121 = arith.constant 0 : index
    %c0_122 = arith.constant 0 : index
    %402 = vector.load %arg11[%c0_121, %c0_122] : memref<2x3xf32, #tpu.memory_space<vmem>>, vector<2x3xf32>
    tpu.vector_store %arg11[%c0_121, %c0_122], %401 {strides = array<i32>} : memref<2x3xf32, #tpu.memory_space<vmem>>, vector<2x3xf32>,
    return
  }
}

</mosaic_0001>

<bundles_post_ra>
// kernel: forward.1
= control target key start
LH: loop header
LB: loop body
LE: loop exit
PB: predicated region body
PF: predicated region fallthrough
CT: control target
= control target key end

     0   :  { %v3718_v1 = vmov 0.0   ;;  %vm3719_vm0 = vmmov 0   ;;  %vm68_vm1 = vcmask 261120   ;;  %s4457_s0 = inlined_call_operand.vmem [shape: f32[16,32], index: 0, kind: input, shape index: {}]   ;;  %s4458_s1 = inlined_call_operand.vmem [shape: f32[2,8], index: 1, kind: input, shape index: {}]   ;;  %s4459_s2 = inlined_call_operand.vmem [shape: bf16[2,32,32], index: 2, kind: input, shape index: {}]   ;;  %s4460_s3 = inlined_call_operand.vmem [shape: bf16[2,32,32], index: 3, kind: input, shape index: {}]   ;;  %s4461_s4 = inlined_call_operand.vmem [shape: bf16[2,32,32], index: 4, kind: input, shape index: {}]   ;;  %s4462_s5 = inlined_call_operand.vmem [shape: bf16[2,32,32], index: 5, kind: input, shape index: {}]   ;;  %s4463_s6 = inlined_call_operand.vmem [shape: bf16[2,32,64], index: 6, kind: input, shape index: {}]   ;;  %s4464_s7 = inlined_call_operand.vmem [shape: bf16[2,64,32], index: 7, kind: input, shape index: {}]   ;;  %s4465_s8 = inlined_call_operand.vmem [shape: f32[2,10,64], index: 8, kind: input, shape index: {}]   ;;  %s4466_s9 = inlined_call_operand.vmem [shape: f32[32,3], index: 9, kind: input, shape index: {}]   ;;  %s4467_s10 = inlined_call_operand.vmem [shape: f32[1,3], index: 10, kind: input, shape index: {}]   ;;  %s4468_s11 = inlined_call_operand.hbm [shape: f32[2,3], index: 11, kind: output, shape index: {}]  }
   0x1   :  { %v3580_v0 = vld [vmem:[%s4459_s2 + $0x8] sm:$0xff]   ;;  %3233 = vmatprep.subr.bf16.mxu1 %v3718_v1  ;;  %v3581_v2 = vld [vmem:[%s4459_s2] sm:$0xff]   ;;  %3249 = vmatprep.subr.bf16.mxu0 %v3718_v1 }
   0x2   :  { %3234 = vmatpush3.bf16.msra.mxu1 %v3580_v0  ;;  %3237 = vmatprep.mubr.msk.bf16.mxu1 %vm3719_vm0, %v3718_v1  ;;  %v66_v3 = vld [vmem:[%s4457_s0] sm:$0xff]  ;;  %v67_v4 = vld [vmem:[%s4457_s0 + $0x8] sm:$0xff] }
   0x3   :  { %3235 = vmatprep.subr.bf16.mxu1 %v3718_v1  ;;  %69 = vst.msk [vmem:[#allocation2] sm:$0xff] %vm68_vm1, %v66_v3  ;;  %70 = vst.msk [vmem:[#allocation2 + $0x8] sm:$0xff] %vm68_vm1, %v67_v4  ;;  %3253 = vmatprep.mubr.msk.bf16.mxu0 %vm3719_vm0, %v3718_v1  ;;  %v3582_v5 = vld [vmem:[%s4460_s3 + $0x8] sm:$0xff]   ;;  %v3583_v9 = vld [vmem:[%s4460_s3] sm:$0xff]  }
   0x6   :  { %3236 = vmatpush3.bf16.msra.mxu1 %v3581_v2 }
   0x7   :  { %3241 = vmatprep.subr.bf16.mxu1 %v3718_v1 }
   0xa   :  { %v3813_v6 = vld [vmem:[#allocation2] sm:$0xff]  ;;  %v3815_v7 = vld [vmem:[#allocation2 + $0x8] sm:$0xff] }
   0xb   :  { %v73_v8 = vpack.c.bf16 %v3815_v7, %v3813_v6 }
   0xd   :  { %3238 = vmatmul.mubr.msk.bf16.vlgmr.msra.gmra.mxu1 %vm68_vm1, %v73_v8 }
   0xe   :  { %3242 = vmatpush3.bf16.msra.mxu1 %v3582_v5  ;;  %3245 = vmatprep.mubr.msk.bf16.mxu1 %vm3719_vm0, %v3718_v1 }
   0xf   :  { %3243 = vmatprep.subr.bf16.mxu1 %v3718_v1 }
  0x12   :  { %3244 = vmatpush3.bf16.msra.mxu1 %v3583_v9 }
  0x13   :  { %3257 = vmatprep.subr.bf16.mxu1 %v3718_v1 }
  0x15   :  { %3246 = vmatmul.mubr.msk.bf16.vlgmr.msra.gmra.mxu1 %vm68_vm1, %v73_v8 }
  0x16   :  { %16 = vsyncpa [#allocation4], 0  ;;  %3259 = vmatprep.mubr.msk.bf16.mxu1 %vm3719_vm0, %v3718_v1  ;;  %v3584_v10 = vld [vmem:[%s4461_s4 + $0x8] sm:$0xff]   ;;  %v3585_v11 = vld [vmem:[%s4461_s4] sm:$0xff]   ;;  %v47_v12 = vlaneseq  ;;  %vm278_vm2 = vcmask 64512   ;;  %s3720_s15 = smov 120  }
  0x17   :  { %3250 = vmatpush3.bf16.msra.mxu0 %v3584_v10  ;;  %v3849_v17 = vld [vmem:[%s4465_s8] sm:$0xff]  ;;  %vm398_vm3 = vcmask 1043456   ;;  %v3721_v49 = vmov 1966171168   ;;  %s3723_s18 = smov 104   ;;  %s3724_s19 = smov 8  }
  0x18   :  { %3251 = vmatprep.subr.bf16.mxu0 %v3718_v1  ;;  %v3841_v13 = vshrl.u32 %v47_v12, 7  ;;  %v45_v50 = vunpack.c.l.s4 %v3721_v49  ;;  %v40_v51 = vld [vmem:[%s4458_s1] sm:$0x3]  ;;  %s3722_s1 = smov 112   ;;  %s3725_s20 = smov 16   ;;  %vm1180_vm4 = vcmask 130048  }
  0x19   :  { %v3019_v52 = vadd.f32 -1.0, %v40_v51  ;;  %s3726_s25 = smov 24   ;;  %vm1183_vm5 = vcmask 195584   ;;  %vm1412_vm6 = vcmask 523264   ;;  %s3727_s16 = smov [#allocation3]   ;;  %vm3003_vm7 = vcmask 17408  }
  0x1a   :  { %v3844_v15 = vsub.s32 1, %v3841_v13  ;;  %v3854_v21 = vsub.s32 0, %v3841_v13  ;;  %v207_v37 = vsub.s32 2, %v3841_v13  ;;  %v46_v53 = vunpack.c.0.s8 %v45_v50 }
  0x1b   :  { %3252 = vmatpush3.bf16.msra.mxu0 %v3585_v11  ;;  %v42_v54 = vmul.f32 1e+09, %v3019_v52 }
  0x1c   :  { %3263 = vmatprep.subr.bf16.mxu0 %v3718_v1  ;;  %v147_v19 = vrot.slane %v3849_v17, %v3844_v15  ;;  %v83_v25 = vrot.slane %v3849_v17, %v3854_v21  ;;  %v208_v38 = vrot.slane %v3849_v17, %v207_v37  ;;  %v49_v55 = vsub.s32 %v46_v53, %v3841_v13 }
  0x1e   :  { %3254 = vmatmul.mubr.msk.bf16.vlgmr.msra.gmra.mxu0 %vm68_vm1, %v73_v8  ;;  %v50_v56 = vrot.slane %v42_v54, %v49_v55 }
  0x1f   :  { %3265 = vmatprep.mubr.msk.bf16.mxu0 %vm3719_vm0, %v3718_v1 }
  0x20   :  { %v58_v57 = vrot.slane %v50_v56, %v49_v55  ;;  %v51_v58 = vcombine.high %v50_v56, %v50_v56 }
  0x22   :  { %v3901_v59 = vrot.slane %v58_v57, %v3854_v21  ;;  %v65_v60 = vrot.slane %v51_v58, %v49_v55 }
  0x24   :  { %v3905_v63 = vrot.slane %v65_v60, %v3854_v21 }
  0xcd   :  { %v133_v14 = vpop.f32.mrf.mxu1 }
  0xce   :  { %v134_v31 = vadd.f32 %v133_v14, %v83_v25 }
  0xcf   :  { %v3239_v16 = vpop.f32.mrf.mxu1 }
  0xd0   :  { %v3869_v34 = vpack.c.bf16 %v134_v31, %v134_v31 }
  0xd1   :  { %v136_v18 = vpop.f32.mrf.mxu1 }
  0xd2   :  { %v137_v35 = vadd.f32 %v136_v18, %v83_v25 }
  0xd3   :  { %v3240_v20 = vpop.f32.mrf.mxu1 }
  0xd4   :  { %v3876_v36 = vpack.c.bf16 %v137_v35, %v137_v35 }
  0xd5   :  { %v194_v22 = vpop.f32.mrf.mxu1 }
  0xd6   :  { %v195_v23 = vadd.f32 %v194_v22, %v147_v19 }
  0xd7   :  { %v3247_v24 = vpop.f32.mrf.mxu1 }
  0xd8   :  { %v3858_v26 = vpack.c.bf16 %v195_v23, %v195_v23 }
  0xd9   :  { %v197_v27 = vpop.f32.mrf.mxu1 }
  0xda   :  { %v198_v28 = vadd.f32 %v197_v27, %v147_v19  ;;  %v283_v29 = vsel %vm278_vm2, %v3858_v26, 0 }
  0xdb   :  { %v3248_v30 = vpop.f32.mrf.mxu1  ;;  %3258 = vmatpush3.bf16.xpose.msra.mxu1 %v283_v29 }
  0xdc   :  { %v3862_v32 = vpack.c.bf16 %v198_v28, %v198_v28  ;;  %3269 = vmatprep.subr.bf16.mxu1 %v3718_v1 }
  0xde   :  { %544 = vrot.lane.b32.xlu1 %v3862_v32, %s3720_s15  ;;  %v329_v33 = vsel %vm278_vm2, %v3862_v32, 0  ;;  %v255_v39 = vpop.f32.mrf.mxu0 }
  0xdf   :  { %3264 = vmatpush3.bf16.xpose.msra.mxu0 %v329_v33  ;;  %v256_v41 = vadd.f32 %v255_v39, %v208_v38 }
  0xe0   :  { %3275 = vmatprep.subr.bf16.mxu0 %v3718_v1  ;;  %v3255_v40 = vpop.f32.mrf.mxu0 }
  0xe1   :  { %v3886_v45 = vpack.c.bf16 %v256_v41, %v256_v41 }
  0xe2   :  { %3260 = vmatmul.mubr.msk.bf16.vlgmr.msra.gmra.mxu1 %vm278_vm2, %v3869_v34  ;;  %v258_v42 = vpop.f32.mrf.mxu0 }
  0xe3   :  { %3271 = vmatprep.mubr.msk.bf16.mxu1 %vm3719_vm0, %v3718_v1  ;;  %v259_v43 = vadd.f32 %v258_v42, %v208_v38  ;;  %v400_v47 = vsel %vm398_vm3, %v3886_v45, 0 }
  0xe4   :  { %v3256_v44 = vpop.f32.mrf.mxu0  ;;  %3270 = vmatpush3.bf16.msra.mxu1 %v400_v47 }
  0xe5   :  { %v3888_v46 = vpack.c.bf16 %v259_v43, %v259_v43  ;;  %3281 = vmatprep.subr.bf16.mxu1 %v3718_v1 }
  0xe6   :  { %3266 = vmatmul.mubr.msk.bf16.vlgmr.msra.gmra.mxu0 %vm278_vm2, %v3876_v36 }
  0xe7   :  { %3277 = vmatprep.mubr.msk.bf16.mxu0 %vm3719_vm0, %v3718_v1  ;;  %v446_v48 = vsel %vm398_vm3, %v3888_v46, 0 }
  0xe8   :  { %3276 = vmatpush3.bf16.msra.mxu0 %v446_v48 }
  0xe9   :  { %3287 = vmatprep.subr.bf16.mxu0 %v3718_v1 }
 0x150   :  { %v545_v28 = vpop.permute.xlu1 %544 }
 0x151   :  { %v550_v43 = vsel %vm278_vm2, %v545_v28, 0 }
 0x1a2   :  { %v319_v61 = vpop.f32.mrf.mxu1 }
 0x1a3   :  { %v320_v62 = vadd.f32 %v319_v61, %v3901_v59 }
 0x1a4   :  { %v3261_v0 = vpop.f32.mrf.mxu1 }
 0x1a5   :  { %v371_v2 = vsel %vm278_vm2, %v320_v62, -inf }
 0x1a6   :  { %v322_v3 = vpop.f32.mrf.mxu1  ;;  %v365_v4 = vpop.f32.mrf.mxu0  ;;  %372 = vmax.xlane.f32.xlu0 %v371_v2 }
 0x1a7   :  { %v366_v5 = vadd.f32 %v365_v4, %v3905_v63 }
 0x1a8   :  { %v3262_v8 = vpop.f32.mrf.mxu1  ;;  %v3267_v9 = vpop.f32.mrf.mxu0 }
 0x1a9   :  { %v374_v10 = vsel %vm278_vm2, %v366_v5, -inf }
 0x1aa   :  { %v368_v11 = vpop.f32.mrf.mxu0  ;;  %375 = vmax.xlane.f32.xlu0 %v374_v10 }
 0x1ac   :  { %v3268_v12 = vpop.f32.mrf.mxu0 }
 0x1c0   :  { %492 = vrot.lane.b32.xlu0 %v3858_v26, %s3720_s15 }
 0x22f   :  { %v373_v14 = vpop.xlane.xlu0 %372 }
 0x230   :  { %v377_v16 = vsub.f32 %v320_v62, %v373_v14 }
 0x232   :  { %v379_v18 = vmul.f32 1.442695, %v377_v16 }
 0x233   :  { %v376_v19 = vpop.xlane.xlu0 %375 }
 0x234   :  { %3608 = vpow2.f32 %v379_v18  ;;  %v378_v20 = vsub.f32 %v366_v5, %v376_v19 }
 0x236   :  { %v381_v22 = vmul.f32 1.442695, %v378_v20 }
 0x237   :  { %v493_v35 = vpop.permute.xlu0 %492 }
 0x238   :  { %3610 = vpow2.f32 %v381_v22  ;;  %v498_v40 = vsel %vm278_vm2, %v493_v35, 0 }
 0x241   :  { %v3609_v23 = vpop.eup %3608 }
 0x242   :  { %v383_v24 = vsel %vm278_vm2, %v3609_v23, 0.0 }
 0x243   :  { %384 = vadd.xlane.f32.xlu1 %v383_v24 }
 0x245   :  { %v3611_v25 = vpop.eup %3610 }
 0x246   :  { %v386_v27 = vsel %vm278_vm2, %v3611_v25, 0.0 }
 0x247   :  { %387 = vadd.xlane.f32.xlu1 %v386_v27 }
 0x258   :  { %489 = vrot.lane.b32.xlu1 %v3869_v34, %s3720_s15 }
 0x25c   :  { %541 = vrot.lane.b32.xlu1 %v3876_v36, %s3720_s15 }
 0x2cc   :  { %v385_v29 = vpop.xlane.xlu1 %384 }
 0x2cd   :  { %3612 = vrcp.f32 %v385_v29 }
 0x2d0   :  { %v388_v30 = vpop.xlane.xlu1 %387 }
 0x2d1   :  { %3614 = vrcp.f32 %v388_v30 }
 0x2d4   :  { %v490_v44 = vpop.permute.xlu1 %489 }
 0x2d8   :  { %v542_v47 = vpop.permute.xlu1 %541 }
 0x2da   :  { %v3613_v31 = vpop.eup %3612 }
 0x2db   :  { %v391_v33 = vmul.f32 %v3613_v31, %v3609_v23 }
 0x2dd   :  { %v393_v38 = vpack.c.bf16 %v391_v33, %v391_v33 }
 0x2de   :  { %v3615_v39 = vpop.eup %3614 }
 0x2df   :  { %3272 = vmatmul.mubr.msk.bf16.vlgmr.msra.gmra.mxu1 %vm278_vm2, %v393_v38  ;;  %v392_v41 = vmul.f32 %v3615_v39, %v3611_v25 }
 0x2e0   :  { %3282 = vmatpush3.bf16.xpose.msra.mxu1 %v498_v40  ;;  %3283 = vmatprep.mubr.msk.bf16.mxu1 %vm3719_vm0, %v3718_v1 }
 0x2e1   :  { %v394_v42 = vpack.c.bf16 %v392_v41, %v392_v41  ;;  %3293 = vmatprep.subr.bf16.mxu1 %v3718_v1 }
 0x2e3   :  { %3278 = vmatmul.mubr.msk.bf16.vlgmr.msra.gmra.mxu0 %vm278_vm2, %v394_v42 }
 0x2e4   :  { %3288 = vmatpush3.bf16.xpose.msra.mxu0 %v550_v43  ;;  %3289 = vmatprep.mubr.msk.bf16.mxu0 %vm3719_vm0, %v3718_v1 }
 0x2e5   :  { %3299 = vmatprep.subr.bf16.mxu0 %v3718_v1 }
 0x2e7   :  { %3284 = vmatmul.mubr.msk.bf16.vlgmr.msra.gmra.mxu1 %vm278_vm2, %v490_v44 }
 0x2e8   :  { %3295 = vmatprep.mubr.msk.bf16.mxu1 %vm3719_vm0, %v3718_v1 }
 0x2eb   :  { %3290 = vmatmul.mubr.msk.bf16.vlgmr.msra.gmra.mxu0 %vm278_vm2, %v542_v47 }
 0x2ec   :  { %3301 = vmatprep.mubr.msk.bf16.mxu0 %vm3719_vm0, %v3718_v1 }
 0x39f   :  { %v3934_v48 = vpop.f32.mrf.mxu1 }
 0x3a1   :  { %v3273_v49 = vpop.f32.mrf.mxu1 }
 0x3a3   :  { %v439_v50 = vpop.f32.mrf.mxu1  ;;  %v3936_v51 = vpop.f32.mrf.mxu0 }
 0x3a5   :  { %v3274_v52 = vpop.f32.mrf.mxu1  ;;  %v3279_v53 = vpop.f32.mrf.mxu0 }
 0x3a7   :  { %v485_v54 = vpop.f32.mrf.mxu0  ;;  %v534_v55 = vpop.f32.mrf.mxu1 }
 0x3a8   :  { %v535_v56 = vadd.f32 %v534_v55, %v3901_v59 }
 0x3a9   :  { %v3280_v57 = vpop.f32.mrf.mxu0  ;;  %v3285_v58 = vpop.f32.mrf.mxu1 }
 0x3aa   :  { %v592_v60 = vsel %vm278_vm2, %v535_v56, -inf }
 0x3ab   :  { %v586_v61 = vpop.f32.mrf.mxu0  ;;  %593 = vmax.xlane.f32.xlu0 %v592_v60  ;;  %v537_v62 = vpop.f32.mrf.mxu1 }
 0x3ac   :  { %v587_v0 = vadd.f32 %v586_v61, %v3905_v63 }
 0x3ad   :  { %v3286_v2 = vpop.f32.mrf.mxu1  ;;  %v3291_v3 = vpop.f32.mrf.mxu0 }
 0x3ae   :  { %v595_v4 = vsel %vm278_vm2, %v587_v0, -inf }
 0x3af   :  { %596 = vmax.xlane.f32.xlu1 %v595_v4  ;;  %v589_v5 = vpop.f32.mrf.mxu0 }
 0x3b1   :  { %v3292_v8 = vpop.f32.mrf.mxu0 }
 0x3c0   :  { %666 = vrot.lane.b32.xlu1 %v3888_v46, %s3720_s15 }
 0x3c4   :  { %716 = vrot.lane.b32.xlu1 %v3858_v26, %s3722_s1 }
 0x3c8   :  { %766 = vrot.lane.b32.xlu1 %v3862_v32, %s3722_s1 }
 0x3cc   :  { %764 = vrot.lane.b32.xlu1 %v3876_v36, %s3722_s1 }
 0x434   :  { %v594_v9 = vpop.xlane.xlu0 %593 }
 0x435   :  { %v598_v10 = vsub.f32 %v535_v56, %v594_v9 }
 0x437   :  { %v600_v11 = vmul.f32 1.442695, %v598_v10 }
 0x438   :  { %v597_v12 = vpop.xlane.xlu1 %596 }
 0x439   :  { %3616 = vpow2.f32 %v600_v11  ;;  %v599_v14 = vsub.f32 %v587_v0, %v597_v12 }
 0x43b   :  { %v602_v16 = vmul.f32 1.442695, %v599_v14 }
 0x43c   :  { %v667_v18 = vpop.permute.xlu1 %666 }
 0x43d   :  { %3618 = vpow2.f32 %v602_v16  ;;  %v672_v19 = vsel %vm398_vm3, %v667_v18, 0 }
 0x43e   :  { %3300 = vmatpush3.bf16.msra.mxu0 %v672_v19 }
 0x43f   :  { %3311 = vmatprep.subr.bf16.mxu0 %v3718_v1 }
 0x440   :  { %v717_v31 = vpop.permute.xlu1 %716 }
 0x441   :  { %v722_v39 = vsel %vm278_vm2, %v717_v31, 0 }
 0x444   :  { %v767_v41 = vpop.permute.xlu1 %766 }
 0x445   :  { %v772_v43 = vsel %vm278_vm2, %v767_v41, 0 }
 0x446   :  { %v3617_v20 = vpop.eup %3616 }
 0x447   :  { %v604_v22 = vsel %vm278_vm2, %v3617_v20, 0.0 }
 0x448   :  { %605 = vadd.xlane.f32.xlu0 %v604_v22  ;;  %v765_v47 = vpop.permute.xlu1 %764 }
 0x44a   :  { %v3619_v23 = vpop.eup %3618 }
 0x44b   :  { %v607_v24 = vsel %vm278_vm2, %v3619_v23, 0.0 }
 0x44c   :  { %608 = vadd.xlane.f32.xlu0 %v607_v24 }
 0x462   :  { %617 = vrot.lane.b32.xlu0 %v3886_v45, %s3720_s15 }
 0x466   :  { %714 = vrot.lane.b32.xlu0 %v3869_v34, %s3722_s1 }
 0x4d1   :  { %v606_v25 = vpop.xlane.xlu0 %605 }
 0x4d2   :  { %3620 = vrcp.f32 %v606_v25 }
 0x4d5   :  { %v609_v27 = vpop.xlane.xlu0 %608 }
 0x4d6   :  { %3622 = vrcp.f32 %v609_v27 }
 0x4d9   :  { %v618_v28 = vpop.permute.xlu0 %617 }
 0x4da   :  { %v623_v29 = vsel %vm398_vm3, %v618_v28, 0 }
 0x4db   :  { %3294 = vmatpush3.bf16.msra.mxu1 %v623_v29 }
 0x4dc   :  { %3305 = vmatprep.subr.bf16.mxu1 %v3718_v1 }
 0x4dd   :  { %v715_v44 = vpop.permute.xlu0 %714 }
 0x4df   :  { %v3621_v30 = vpop.eup %3620 }
 0x4e0   :  { %v612_v33 = vmul.f32 %v3621_v30, %v3617_v20 }
 0x4e2   :  { %v614_v35 = vpack.c.bf16 %v612_v33, %v612_v33 }
 0x4e3   :  { %v3623_v38 = vpop.eup %3622 }
 0x4e4   :  { %3296 = vmatmul.mubr.msk.bf16.vlgmr.msra.gmra.mxu1 %vm278_vm2, %v614_v35  ;;  %v613_v40 = vmul.f32 %v3623_v38, %v3619_v23 }
 0x4e5   :  { %3306 = vmatpush3.bf16.xpose.msra.mxu1 %v722_v39  ;;  %3307 = vmatprep.mubr.msk.bf16.mxu1 %vm3719_vm0, %v3718_v1 }
 0x4e6   :  { %v615_v42 = vpack.c.bf16 %v613_v40, %v613_v40  ;;  %3317 = vmatprep.subr.bf16.mxu1 %v3718_v1 }
 0x4e8   :  { %3302 = vmatmul.mubr.msk.bf16.vlgmr.msra.gmra.mxu0 %vm278_vm2, %v615_v42 }
 0x4e9   :  { %3312 = vmatpush3.bf16.xpose.msra.mxu0 %v772_v43  ;;  %3313 = vmatprep.mubr.msk.bf16.mxu0 %vm3719_vm0, %v3718_v1 }
 0x4ea   :  { %3323 = vmatprep.subr.bf16.mxu0 %v3718_v1 }
 0x4ec   :  { %3308 = vmatmul.mubr.msk.bf16.vlgmr.msra.gmra.mxu1 %vm278_vm2, %v715_v44 }
 0x4ed   :  { %3319 = vmatprep.mubr.msk.bf16.mxu1 %vm3719_vm0, %v3718_v1 }
 0x4f0   :  { %3314 = vmatmul.mubr.msk.bf16.vlgmr.msra.gmra.mxu0 %vm278_vm2, %v765_v47 }
 0x4f1   :  { %3325 = vmatprep.mubr.msk.bf16.mxu0 %vm3719_vm0, %v3718_v1 }
 0x5a4   :  { %v3976_v49 = vpop.f32.mrf.mxu1 }
 0x5a6   :  { %v3297_v50 = vpop.f32.mrf.mxu1 }
 0x5a8   :  { %v662_v52 = vpop.f32.mrf.mxu1  ;;  %v3978_v53 = vpop.f32.mrf.mxu0 }
 0x5a9   :  { %v3550_v54 = vpack.i.bf16 %v3978_v53, %v3976_v49 }
 0x5aa   :  { %v3298_v55 = vpop.f32.mrf.mxu1  ;;  %v3303_v56 = vpop.f32.mrf.mxu0 }
 0x5ac   :  { %v711_v57 = vpop.f32.mrf.mxu0  ;;  %v758_v58 = vpop.f32.mrf.mxu1 }
 0x5ad   :  { %v759_v60 = vadd.f32 %v758_v58, %v3901_v59 }
 0x5ae   :  { %v3304_v61 = vpop.f32.mrf.mxu0  ;;  %v3309_v62 = vpop.f32.mrf.mxu1 }
 0x5af   :  { %v814_v0 = vsel %vm278_vm2, %v759_v60, -inf }
 0x5b0   :  { %v808_v2 = vpop.f32.mrf.mxu0  ;;  %815 = vmax.xlane.f32.xlu0 %v814_v0  ;;  %v761_v3 = vpop.f32.mrf.mxu1 }
 0x5b1   :  { %v809_v4 = vadd.f32 %v808_v2, %v3905_v63 }
 0x5b2   :  { %v3310_v5 = vpop.f32.mrf.mxu1  ;;  %v3315_v8 = vpop.f32.mrf.mxu0 }
 0x5b3   :  { %v817_v9 = vsel %vm278_vm2, %v809_v4, -inf }
 0x5b4   :  { %818 = vmax.xlane.f32.xlu1 %v817_v9  ;;  %v811_v10 = vpop.f32.mrf.mxu0 }
 0x5b6   :  { %v3316_v11 = vpop.f32.mrf.mxu0 }
 0x5c5   :  { %886 = vrot.lane.b32.xlu1 %v3888_v46, %s3722_s1 }
 0x5c9   :  { %936 = vrot.lane.b32.xlu1 %v3858_v26, %s3723_s18 }
 0x5cd   :  { %986 = vrot.lane.b32.xlu1 %v3862_v32, %s3723_s18 }
 0x5d1   :  { %984 = vrot.lane.b32.xlu1 %v3876_v36, %s3723_s18 }
 0x639   :  { %v816_v12 = vpop.xlane.xlu0 %815 }
 0x63a   :  { %v820_v14 = vsub.f32 %v759_v60, %v816_v12 }
 0x63c   :  { %v822_v16 = vmul.f32 1.442695, %v820_v14 }
 0x63d   :  { %v819_v18 = vpop.xlane.xlu1 %818 }
 0x63e   :  { %3624 = vpow2.f32 %v822_v16  ;;  %v821_v19 = vsub.f32 %v809_v4, %v819_v18 }
 0x640   :  { %v824_v20 = vmul.f32 1.442695, %v821_v19 }
 0x641   :  { %v887_v22 = vpop.permute.xlu1 %886 }
 0x642   :  { %3626 = vpow2.f32 %v824_v20  ;;  %v892_v23 = vsel %vm398_vm3, %v887_v22, 0 }
 0x643   :  { %3324 = vmatpush3.bf16.msra.mxu0 %v892_v23 }
 0x644   :  { %3335 = vmatprep.subr.bf16.mxu0 %v3718_v1 }
 0x645   :  { %v937_v31 = vpop.permute.xlu1 %936 }
 0x646   :  { %v942_v39 = vsel %vm278_vm2, %v937_v31, 0 }
 0x649   :  { %v987_v40 = vpop.permute.xlu1 %986 }
 0x64a   :  { %v992_v42 = vsel %vm278_vm2, %v987_v40, 0 }
 0x64b   :  { %v3625_v26 = vpop.eup %3624 }
 0x64c   :  { %v826_v32 = vsel %vm278_vm2, %v3625_v26, 0.0 }
 0x64d   :  { %827 = vadd.xlane.f32.xlu0 %v826_v32  ;;  %v985_v44 = vpop.permute.xlu1 %984 }
 0x64f   :  { %v3627_v24 = vpop.eup %3626 }
 0x650   :  { %v829_v36 = vsel %vm278_vm2, %v3627_v24, 0.0 }
 0x651   :  { %830 = vadd.xlane.f32.xlu0 %v829_v36 }
 0x667   :  { %838 = vrot.lane.b32.xlu0 %v3886_v45, %s3722_s1 }
 0x66b   :  { %934 = vrot.lane.b32.xlu0 %v3869_v34, %s3723_s18 }
 0x6d6   :  { %v828_v25 = vpop.xlane.xlu0 %827 }
 0x6d7   :  { %3628 = vrcp.f32 %v828_v25 }
 0x6da   :  { %v831_v27 = vpop.xlane.xlu0 %830 }
 0x6db   :  { %3630 = vrcp.f32 %v831_v27 }
 0x6de   :  { %v839_v28 = vpop.permute.xlu0 %838 }
 0x6df   :  { %v844_v29 = vsel %vm398_vm3, %v839_v28, 0 }
 0x6e0   :  { %3318 = vmatpush3.bf16.msra.mxu1 %v844_v29 }
 0x6e1   :  { %3329 = vmatprep.subr.bf16.mxu1 %v3718_v1 }
 0x6e2   :  { %v935_v43 = vpop.permute.xlu0 %934 }
 0x6e4   :  { %v3629_v30 = vpop.eup %3628 }
 0x6e5   :  { %v834_v33 = vmul.f32 %v3629_v30, %v3625_v26 }
 0x6e7   :  { %v836_v35 = vpack.c.bf16 %v834_v33, %v834_v33 }
 0x6e8   :  { %v3631_v38 = vpop.eup %3630 }
 0x6e9   :  { %3320 = vmatmul.mubr.msk.bf16.vlgmr.msra.gmra.mxu1 %vm278_vm2, %v836_v35  ;;  %v835_v34 = vmul.f32 %v3631_v38, %v3627_v24  ;;  %v3586_v35 = vld [vmem:[%s4462_s5 + $0x8] sm:$0xff]   ;;  %v3587_v38 = vld [vmem:[%s4462_s5] sm:$0xff]  }
 0x6ea   :  { %3330 = vmatpush3.bf16.xpose.msra.mxu1 %v942_v39  ;;  %3331 = vmatprep.mubr.msk.bf16.mxu1 %vm3719_vm0, %v3718_v1 }
 0x6eb   :  { %v837_v41 = vpack.c.bf16 %v835_v34, %v835_v34  ;;  %3341 = vmatprep.subr.bf16.mxu1 %v3718_v1 }
 0x6ed   :  { %3326 = vmatmul.mubr.msk.bf16.vlgmr.msra.gmra.mxu0 %vm278_vm2, %v837_v41 }
 0x6ee   :  { %3336 = vmatpush3.bf16.xpose.msra.mxu0 %v992_v42  ;;  %3337 = vmatprep.mubr.msk.bf16.mxu0 %vm3719_vm0, %v3718_v1 }
 0x6ef   :  { %3347 = vmatprep.subr.bf16.mxu0 %v3718_v1 }
 0x6f1   :  { %3332 = vmatmul.mubr.msk.bf16.vlgmr.msra.gmra.mxu1 %vm278_vm2, %v935_v43 }
 0x6f2   :  { %3343 = vmatprep.mubr.msk.bf16.mxu1 %vm3719_vm0, %v3718_v1 }
 0x6f5   :  { %3338 = vmatmul.mubr.msk.bf16.vlgmr.msra.gmra.mxu0 %vm278_vm2, %v985_v44 }
 0x6f6   :  { %3349 = vmatprep.mubr.msk.bf16.mxu0 %vm3719_vm0, %v3718_v1 }
 0x7a9   :  { %v880_v47 = vpop.f32.mrf.mxu1 }
 0x7ab   :  { %v3321_v50 = vpop.f32.mrf.mxu1 }
 0x7ad   :  { %v883_v52 = vpop.f32.mrf.mxu1  ;;  %v928_v55 = vpop.f32.mrf.mxu0 }
 0x7ae   :  { %v3555_v14 = vpack.i.bf16 %v928_v55, %v880_v47 }
 0x7af   :  { %v3322_v56 = vpop.f32.mrf.mxu1  ;;  %v3327_v57 = vpop.f32.mrf.mxu0 }
 0x7b1   :  { %v931_v58 = vpop.f32.mrf.mxu0  ;;  %v978_v60 = vpop.f32.mrf.mxu1 }
 0x7b2   :  { %v979_v61 = vadd.f32 %v978_v60, %v3901_v59 }
 0x7b3   :  { %v3328_v62 = vpop.f32.mrf.mxu0  ;;  %v3333_v0 = vpop.f32.mrf.mxu1 }
 0x7b4   :  { %v1034_v2 = vsel %vm278_vm2, %v979_v61, -inf }
 0x7b5   :  { %v1028_v3 = vpop.f32.mrf.mxu0  ;;  %1035 = vmax.xlane.f32.xlu0 %v1034_v2  ;;  %v981_v4 = vpop.f32.mrf.mxu1 }
 0x7b6   :  { %v1029_v5 = vadd.f32 %v1028_v3, %v3905_v63 }
 0x7b7   :  { %v3334_v8 = vpop.f32.mrf.mxu1  ;;  %v3339_v9 = vpop.f32.mrf.mxu0 }
 0x7b8   :  { %v1037_v10 = vsel %vm278_vm2, %v1029_v5, -inf }
 0x7b9   :  { %1038 = vmax.xlane.f32.xlu1 %v1037_v10  ;;  %v1031_v11 = vpop.f32.mrf.mxu0 }
 0x7bb   :  { %v3340_v12 = vpop.f32.mrf.mxu0 }
 0x7ca   :  { %1106 = vrot.lane.b32.xlu1 %v3888_v46, %s3723_s18 }
 0x7ce   :  { %3551 = vrot.lane.b32.xlu1 %v3550_v54, %s3724_s19 }
 0x7d2   :  { %3556 = vrot.lane.b32.xlu1 %v3555_v14, %s3725_s20 }
 0x83e   :  { %v1036_v16 = vpop.xlane.xlu0 %1035 }
 0x83f   :  { %v1040_v18 = vsub.f32 %v979_v61, %v1036_v16 }
 0x841   :  { %v1042_v19 = vmul.f32 1.442695, %v1040_v18 }
 0x842   :  { %v1039_v20 = vpop.xlane.xlu1 %1038 }
 0x843   :  { %3632 = vpow2.f32 %v1042_v19  ;;  %v1041_v22 = vsub.f32 %v1029_v5, %v1039_v20 }
 0x845   :  { %v1044_v23 = vmul.f32 1.442695, %v1041_v22 }
 0x846   :  { %v1107_v26 = vpop.permute.xlu1 %1106 }
 0x847   :  { %3634 = vpow2.f32 %v1044_v23  ;;  %v1112_v46 = vsel %vm398_vm3, %v1107_v26, 0 }
 0x848   :  { %3348 = vmatpush3.bf16.msra.mxu0 %v1112_v46 }
 0x849   :  { %3361 = vmatprep.subr.bf16.mxu0 %v3718_v1 }
 0x84a   :  { %v3552_v52 = vpop.permute.xlu1 %3551 }
 0x84b   :  { %v3554_v56 = vunpack.i.h.bf16 %v3552_v52  ;;  %v3553_v57 = vunpack.i.l.bf16 %v3552_v52 }
 0x84d   :  { %v1179_v62 = vsel %vm278_vm2, %v3936_v51, %v3554_v56  ;;  %v1178_v0 = vsel %vm278_vm2, %v3934_v48, %v3553_v57  ;;  %v1193_v51 = vsub.s32 3, %v3841_v13  ;;  %v3590_v57 = vld [vmem:[%s4464_s7 + $0x18] sm:$0xff]  }
 0x84e   :  { %v3557_v55 = vpop.permute.xlu1 %3556 }
 0x84f   :  { %v3559_v58 = vunpack.i.h.bf16 %v3557_v55  ;;  %v3558_v60 = vunpack.i.l.bf16 %v3557_v55  ;;  %v1194_v48 = vrot.slane %v3849_v17, %v1193_v51 }
 0x850   :  { %v3633_v49 = vpop.eup %3632 }
 0x851   :  { %v1046_v53 = vsel %vm278_vm2, %v3633_v49, 0.0  ;;  %v1182_v4 = vsel %vm1180_vm4, %v1179_v62, %v3559_v58  ;;  %v1181_v5 = vsel %vm1180_vm4, %v1178_v0, %v3558_v60  ;;  %v3591_v58 = vld [vmem:[%s4464_s7 + $0x10] sm:$0xff]   ;;  %v3592_v60 = vld [vmem:[%s4464_s7 + $0x8] sm:$0xff]   ;;  %v1299_v62 = vsub.s32 6, %v3841_v13 }
 0x852   :  { %1047 = vadd.xlane.f32.xlu0 %v1046_v53 }
 0x853   :  { %v1300_v0 = vrot.slane %v3849_v17, %v1299_v62 }
 0x854   :  { %v3635_v54 = vpop.eup %3634 }
 0x855   :  { %v1049_v32 = vsel %vm278_vm2, %v3635_v54, 0.0 }
 0x856   :  { %1050 = vadd.xlane.f32.xlu0 %v1049_v32 }
 0x86c   :  { %1058 = vrot.lane.b32.xlu0 %v3886_v45, %s3723_s18 }
 0x8db   :  { %v1048_v24 = vpop.xlane.xlu0 %1047 }
 0x8dc   :  { %3636 = vrcp.f32 %v1048_v24 }
 0x8df   :  { %v1051_v36 = vpop.xlane.xlu0 %1050 }
 0x8e0   :  { %3638 = vrcp.f32 %v1051_v36 }
 0x8e3   :  { %v1059_v25 = vpop.permute.xlu0 %1058 }
 0x8e4   :  { %v1064_v27 = vsel %vm398_vm3, %v1059_v25, 0 }
 0x8e5   :  { %3342 = vmatpush3.bf16.msra.mxu1 %v1064_v27 }
 0x8e6   :  { %3353 = vmatprep.subr.bf16.mxu1 %v3718_v1 }
 0x8e9   :  { %v3637_v28 = vpop.eup %3636 }
 0x8ea   :  { %v1054_v29 = vmul.f32 %v3637_v28, %v3633_v49  ;;  %v3589_v28 = vld [vmem:[%s4463_s6] sm:$0xff]  }
 0x8ec   :  { %v1056_v30 = vpack.c.bf16 %v1054_v29, %v1054_v29 }
 0x8ed   :  { %v3639_v31 = vpop.eup %3638 }
 0x8ee   :  { %3344 = vmatmul.mubr.msk.bf16.vlgmr.msra.gmra.mxu1 %vm278_vm2, %v1056_v30  ;;  %v1055_v33 = vmul.f32 %v3639_v31, %v3635_v54 }
 0x8ef   :  { %3357 = vmatprep.mubr.msk.bf16.mxu1 %vm3719_vm0, %v3718_v1  ;;  %3354 = vmatpush3.bf16.msra.mxu1 %v3586_v35 }
 0x8f0   :  { %v1057_v45 = vpack.c.bf16 %v1055_v33, %v1055_v33  ;;  %3355 = vmatprep.subr.bf16.mxu1 %v3718_v1 }
 0x8f2   :  { %3350 = vmatmul.mubr.msk.bf16.vlgmr.msra.gmra.mxu0 %vm278_vm2, %v1057_v45 }
 0x8f3   :  { %3365 = vmatprep.mubr.msk.bf16.mxu0 %vm3719_vm0, %v3718_v1  ;;  %3356 = vmatpush3.bf16.msra.mxu1 %v3587_v38  ;;  %v1282_v38 = vsub.s32 4, %v3841_v13 }
 0x8f4   :  { %3369 = vmatprep.subr.bf16.mxu1 %v3718_v1 }
 0x9ae   :  { %v1100_v39 = vpop.f32.mrf.mxu1 }
 0x9b0   :  { %v3345_v34 = vpop.f32.mrf.mxu1 }
 0x9b2   :  { %v1103_v40 = vpop.f32.mrf.mxu1  ;;  %v1148_v41 = vpop.f32.mrf.mxu0 }
 0x9b3   :  { %v3560_v42 = vpack.i.bf16 %v1148_v41, %v1100_v39  ;;  %v1283_v40 = vrot.slane %v3849_v17, %v1282_v38  ;;  %v1288_v41 = vsub.s32 5, %v3841_v13 }
 0x9b4   :  { %v3346_v43 = vpop.f32.mrf.mxu1  ;;  %v3351_v44 = vpop.f32.mrf.mxu0 }
 0x9b5   :  { %3561 = vrot.lane.b32.xlu0 %v3560_v42, %s3726_s25 }
 0x9b6   :  { %v1151_v47 = vpop.f32.mrf.mxu0 }
 0x9b7   :  { %v1289_v47 = vrot.slane %v3849_v17, %v1288_v41 }
 0x9b8   :  { %v3352_v50 = vpop.f32.mrf.mxu0 }
 0xa27   :  { %v3562_v61 = vpop.permute.xlu0 %3561 }
 0xa28   :  { %v3564_v2 = vunpack.i.h.bf16 %v3562_v61  ;;  %v3563_v3 = vunpack.i.l.bf16 %v3562_v61  ;;  %v3593_v61 = vld [vmem:[%s4464_s7] sm:$0xff]  }
 0xa2a   :  { %v1185_v8 = vsel %vm1183_vm5, %v1182_v4, %v3564_v2  ;;  %v1184_v9 = vsel %vm1183_vm5, %v1181_v5, %v3563_v3 }
 0xa2b   :  { %v1186_v10 = vpack.c.bf16 %v1185_v8, %v1184_v9 }
 0xa2d   :  { %3358 = vmatmul.mubr.msk.bf16.vlgmr.msra.gmra.mxu1 %vm68_vm1, %v1186_v10 }
 0xa2e   :  { %3377 = vmatprep.mubr.msk.bf16.mxu1 %vm3719_vm0, %v3718_v1  ;;  %3370 = vmatpush3.bf16.msra.mxu1 %v3590_v57  ;;  %v3595_v57 = vld [vmem:[%s4461_s4 + $0x18] sm:$0xff]  }
 0xa2f   :  { %3371 = vmatprep.subr.bf16.mxu1 %v3718_v1 }
 0xa32   :  { %3372 = vmatpush3.bf16.msra.mxu1 %v3591_v58  ;;  %v3596_v58 = vld [vmem:[%s4459_s2 + $0x10] sm:$0xff]  }
 0xa33   :  { %3373 = vmatprep.subr.bf16.mxu1 %v3718_v1 }
 0xa36   :  { %3374 = vmatpush3.bf16.msra.mxu1 %v3592_v60  ;;  %v3597_v60 = vld [vmem:[%s4461_s4 + $0x10] sm:$0xff]  }
 0xa37   :  { %3375 = vmatprep.subr.bf16.mxu1 %v3718_v1 }
 0xa3a   :  { %3376 = vmatpush3.bf16.msra.mxu1 %v3593_v61 }
 0xa3b   :  { %3397 = vmatprep.subr.bf16.mxu1 %v3718_v1 }
 0xaed   :  { %v1244_v11 = vpop.f32.mrf.mxu1 }
 0xaee   :  { %v1245_v12 = vadd.f32 %v1244_v11, %v1194_v48 }
 0xaef   :  { %v3359_v14 = vpop.f32.mrf.mxu1 }
 0xaf0   :  { %v1251_v16 = vadd.f32 %v1245_v12, %v3813_v6 }
 0xaf1   :  { %v1247_v18 = vpop.f32.mrf.mxu1 }
 0xaf2   :  { %v1248_v19 = vadd.f32 %v1247_v18, %v1194_v48  ;;  %v1253_v20 = vsel %vm68_vm1, %v1251_v16, 0.0 }
 0xaf3   :  { %1254 = vadd.xlane.f32.xlu1 %v1253_v20  ;;  %v3360_v22 = vpop.f32.mrf.mxu1 }
 0xaf4   :  { %v1252_v23 = vadd.f32 %v1248_v19, %v3815_v7  ;;  %v3588_v7 = vld [vmem:[%s4463_s6 + $0x8] sm:$0xff]  }
 0xaf5   :  { %3362 = vmatpush3.bf16.msra.mxu0 %v3588_v7 }
 0xaf6   :  { %v1256_v26 = vsel %vm68_vm1, %v1252_v23, 0.0  ;;  %3363 = vmatprep.subr.bf16.mxu0 %v3718_v1 }
 0xaf7   :  { %1257 = vadd.xlane.f32.xlu0 %v1256_v26 }
 0xaf9   :  { %3364 = vmatpush3.bf16.msra.mxu0 %v3589_v28 }
 0xafa   :  { %3381 = vmatprep.subr.bf16.mxu0 %v3718_v1 }
 0xb7c   :  { %v1255_v46 = vpop.xlane.xlu1 %1254 }
 0xb7d   :  { %v1260_v49 = vmul.f32 0.03125, %v1255_v46 }
 0xb7f   :  { %v1262_v53 = vsub.f32 %v1251_v16, %v1260_v49 }
 0xb80   :  { %v1258_v54 = vpop.xlane.xlu0 %1257 }
 0xb81   :  { %v1261_v32 = vmul.f32 0.03125, %v1258_v54  ;;  %v1264_v24 = vmul.f32 %v1262_v53, %v1262_v53 }
 0xb83   :  { %v1263_v36 = vsub.f32 %v1252_v23, %v1261_v32  ;;  %v1266_v6 = vsel %vm68_vm1, %v1264_v24, 0.0 }
 0xb84   :  { %1267 = vadd.xlane.f32.xlu0 %v1266_v6  ;;  %v1386_v6 = vsub.s32 7, %v3841_v13 }
 0xb85   :  { %v1265_v25 = vmul.f32 %v1263_v36, %v1263_v36 }
 0xb87   :  { %v1269_v27 = vsel %vm68_vm1, %v1265_v25, 0.0  ;;  %v1387_v25 = vrot.slane %v3849_v17, %v1386_v6 }
 0xb88   :  { %1270 = vadd.xlane.f32.xlu0 %v1269_v27 }
 0xc0d   :  { %v1268_v29 = vpop.xlane.xlu0 %1267 }
 0xc0e   :  { %v1272_v30 = vmul.f32 0.03125, %v1268_v29 }
 0xc10   :  { %v1274_v31 = vadd.f32 1e-12, %v1272_v30 }
 0xc11   :  { %v1271_v33 = vpop.xlane.xlu0 %1270 }
 0xc12   :  { %3640 = vrsqrt.f32 %v1274_v31  ;;  %v1273_v45 = vmul.f32 0.03125, %v1271_v33 }
 0xc14   :  { %v1275_v35 = vadd.f32 1e-12, %v1273_v45 }
 0xc16   :  { %3642 = vrsqrt.f32 %v1275_v35 }
 0xc1f   :  { %v3641_v39 = vpop.eup %3640 }
 0xc20   :  { %v1278_v34 = vmul.f32 %v3641_v39, %v1262_v53 }
 0xc22   :  { %v1284_v44 = vmul.f32 %v1283_v40, %v1278_v34 }
 0xc23   :  { %v3643_v42 = vpop.eup %3642 }
 0xc24   :  { %v1279_v43 = vmul.f32 %v3643_v42, %v1263_v36  ;;  %v1290_v52 = vadd.f32 %v1289_v47, %v1284_v44 }
 0xc26   :  { %v1285_v50 = vmul.f32 %v1283_v40, %v1279_v43 }
 0xc28   :  { %v1291_v55 = vadd.f32 %v1289_v47, %v1285_v50 }
 0xc2a   :  { %v1292_v56 = vpack.c.bf16 %v1291_v55, %v1290_v52 }
 0xc2c   :  { %3366 = vmatmul.mubr.msk.bf16.vlgmr.msra.gmra.mxu0 %vm68_vm1, %v1292_v56 }
 0xc2d   :  { %3385 = vmatprep.mubr.msk.bf16.mxu0 %vm3719_vm0, %v3718_v1 }
 0xcec   :  { %v1350_v2 = vpop.f32.mrf.mxu0 }
 0xced   :  { %v1351_v3 = vadd.f32 %v1350_v2, %v1300_v0 }
 0xcee   :  { %v3367_v4 = vpop.f32.mrf.mxu0 }
 0xcef   :  { %v1357_v5 = vmul.f32 %v1351_v3, %v1351_v3 }
 0xcf0   :  { %v1353_v8 = vpop.f32.mrf.mxu0 }
 0xcf1   :  { %v1359_v9 = vmul.f32 %v1357_v5, %v1351_v3  ;;  %v1354_v10 = vadd.f32 %v1353_v8, %v1300_v0  ;;  %v75_v8 = vld [vmem:[%s4465_s8 + $0x8] sm:$0x3] }
 0xcf2   :  { %v3368_v48 = vpop.f32.mrf.mxu0 }
 0xcf3   :  { %v1361_v11 = vmul.f32 0.044715, %v1359_v9  ;;  %v1358_v12 = vmul.f32 %v1354_v10, %v1354_v10  ;;  %v1488_v9 = vrot.slane %v75_v8, %v3854_v21  ;;  %v1494_v48 = vrot.slane %v75_v8, %v3844_v15 }
 0xcf5   :  { %v1363_v14 = vadd.f32 %v1361_v11, %v1351_v3  ;;  %v1360_v16 = vmul.f32 %v1358_v12, %v1354_v10 }
 0xcf7   :  { %v1365_v18 = vmul.f32 0.7978846, %v1363_v14  ;;  %v1362_v19 = vmul.f32 0.044715, %v1360_v16 }
 0xcf9   :  { %3644 = vtanh.f32 %v1365_v18  ;;  %v1364_v20 = vadd.f32 %v1362_v19, %v1354_v10 }
 0xcfb   :  { %v1366_v22 = vmul.f32 0.7978846, %v1364_v20 }
 0xcfd   :  { %3646 = vtanh.f32 %v1366_v22 }
 0xd06   :  { %v3645_v23 = vpop.eup %3644 }
 0xd07   :  { %v1369_v26 = vadd.f32 1.0, %v3645_v23 }
 0xd09   :  { %v1371_v49 = vmul.f32 0.5, %v1369_v26  ;;  %v3598_v26 = vld [vmem:[%s4460_s3 + $0x18] sm:$0xff]  }
 0xd0a   :  { %v3647_v46 = vpop.eup %3646 }
 0xd0b   :  { %v1370_v53 = vadd.f32 1.0, %v3647_v46  ;;  %v1373_v32 = vmul.f32 %v1371_v49, %v1351_v3  ;;  %v3599_v49 = vld [vmem:[%s4460_s3 + $0x10] sm:$0xff]  }
 0xd0d   :  { %v1372_v54 = vmul.f32 0.5, %v1370_v53 }
 0xd0f   :  { %v1374_v24 = vmul.f32 %v1372_v54, %v1354_v10 }
 0xd11   :  { %v1375_v36 = vpack.c.bf16 %v1374_v24, %v1373_v32 }
 0xd13   :  { %3378 = vmatmul.mubr.msk.bf16.vlgmr.msra.gmra.mxu1 %vm1412_vm6, %v1375_v36  ;;  %v4174_v36 = vld [vmem:[%s4465_s8 + $0x10] sm:$0xff] }
 0xd14   :  { %3401 = vmatprep.mubr.msk.bf16.mxu1 %vm3719_vm0, %v3718_v1  ;;  %3398 = vmatpush3.bf16.msra.mxu1 %v3595_v57 }
 0xd15   :  { %3399 = vmatprep.subr.bf16.mxu1 %v3718_v1 }
 0xd18   :  { %3400 = vmatpush3.bf16.msra.mxu1 %v3597_v60 }
 0xd19   :  { %3411 = vmatprep.subr.bf16.mxu1 %v3718_v1 }
 0xdd3   :  { %v1450_v27 = vpop.f32.mrf.mxu1 }
 0xdd4   :  { %v1451_v7 = vadd.f32 %v1450_v27, %v1387_v25 }
 0xdd5   :  { %v3379_v28 = vpop.f32.mrf.mxu1 }
 0xdd6   :  { %v1457_v29 = vadd.f32 %v1451_v7, %v1290_v52  ;;  %v1578_v7 = vrot.slane %v4174_v36, %v3844_v15 }
 0xdd7   :  { %v1453_v30 = vpop.f32.mrf.mxu1 }
 0xdd8   :  { %v1454_v31 = vadd.f32 %v1453_v30, %v1387_v25  ;;  %v1459_v33 = vsel %vm68_vm1, %v1457_v29, 0.0 }
 0xdd9   :  { %1460 = vadd.xlane.f32.xlu1 %v1459_v33  ;;  %v3380_v45 = vpop.f32.mrf.mxu1 }
 0xdda   :  { %v1458_v35 = vadd.f32 %v1454_v31, %v1291_v55  ;;  %v3594_v55 = vld [vmem:[%s4459_s2 + $0x18] sm:$0xff]   ;;  %v1640_v31 = vrot.slane %v4174_v36, %v207_v37 }
 0xddb   :  { %3382 = vmatpush3.bf16.msra.mxu0 %v3594_v55 }
 0xddc   :  { %v1462_v39 = vsel %vm68_vm1, %v1458_v35, 0.0  ;;  %3383 = vmatprep.subr.bf16.mxu0 %v3718_v1 }
 0xddd   :  { %1463 = vadd.xlane.f32.xlu0 %v1462_v39 }
 0xddf   :  { %3384 = vmatpush3.bf16.msra.mxu0 %v3596_v58 }
 0xde0   :  { %3389 = vmatprep.subr.bf16.mxu0 %v3718_v1 }
 0xe62   :  { %v1461_v34 = vpop.xlane.xlu1 %1460 }
 0xe63   :  { %v1465_v40 = vmul.f32 0.03125, %v1461_v34 }
 0xe65   :  { %v1467_v42 = vsub.f32 %v1457_v29, %v1465_v40 }
 0xe66   :  { %v1464_v43 = vpop.xlane.xlu0 %1463 }
 0xe67   :  { %v1466_v44 = vmul.f32 0.03125, %v1464_v43  ;;  %v1469_v17 = vmul.f32 %v1467_v42, %v1467_v42 }
 0xe69   :  { %v1468_v47 = vsub.f32 %v1458_v35, %v1466_v44  ;;  %v1471_v50 = vsel %vm68_vm1, %v1469_v17, 0.0  ;;  %v1513_v35 = vrot.slane %v4174_v36, %v3854_v21 }
 0xe6a   :  { %1472 = vadd.xlane.f32.xlu1 %v1471_v50 }
 0xe6b   :  { %v1470_v52 = vmul.f32 %v1468_v47, %v1468_v47 }
 0xe6d   :  { %v1474_v56 = vsel %vm68_vm1, %v1470_v52, 0.0 }
 0xe6e   :  { %1475 = vadd.xlane.f32.xlu0 %v1474_v56 }
 0xef3   :  { %v1473_v61 = vpop.xlane.xlu1 %1472 }
 0xef4   :  { %v1477_v0 = vmul.f32 0.03125, %v1473_v61 }
 0xef6   :  { %v1479_v2 = vadd.f32 1e-12, %v1477_v0 }
 0xef7   :  { %v1476_v3 = vpop.xlane.xlu0 %1475 }
 0xef8   :  { %3648 = vrsqrt.f32 %v1479_v2  ;;  %v1478_v4 = vmul.f32 0.03125, %v1476_v3 }
 0xefa   :  { %v1480_v5 = vadd.f32 1e-12, %v1478_v4 }
 0xefc   :  { %3650 = vrsqrt.f32 %v1480_v5 }
 0xf05   :  { %v3649_v10 = vpop.eup %3648 }
 0xf06   :  { %v1483_v11 = vmul.f32 %v3649_v10, %v1467_v42 }
 0xf08   :  { %v1489_v12 = vmul.f32 %v1488_v9, %v1483_v11 }
 0xf09   :  { %v3651_v14 = vpop.eup %3650 }
 0xf0a   :  { %v1495_v16 = vadd.f32 %v1494_v48, %v1489_v12  ;;  %v1484_v18 = vmul.f32 %v3651_v14, %v1468_v47 }
 0xf0c   :  { %1497 = vst.msk [vmem:[#allocation2] sm:$0xff] %vm68_vm1, %v1495_v16  ;;  %v1490_v19 = vmul.f32 %v1488_v9, %v1484_v18 }
 0xf0e   :  { %v1496_v20 = vadd.f32 %v1494_v48, %v1490_v19 }
 0xf10   :  { %1498 = vst.msk [vmem:[#allocation2 + $0x8] sm:$0xff] %vm68_vm1, %v1496_v20 }
 0xf13   :  { %v4148_v22 = vld [vmem:[#allocation2] sm:$0xff] }
 0xf17   :  { %v4150_v23 = vld [vmem:[#allocation2 + $0x8] sm:$0xff] }
 0xf18   :  { %v1501_v46 = vpack.c.bf16 %v4150_v23, %v4148_v22 }
 0xf1a   :  { %3386 = vmatmul.mubr.msk.bf16.vlgmr.msra.gmra.mxu0 %vm68_vm1, %v1501_v46  ;;  %3402 = vmatmul.mubr.msk.bf16.vlgmr.msra.gmra.mxu1 %vm68_vm1, %v1501_v46 }
 0xf1b   :  { %3390 = vmatpush3.bf16.msra.mxu0 %v3598_v26  ;;  %3393 = vmatprep.mubr.msk.bf16.mxu0 %vm3719_vm0, %v3718_v1 }
 0xf1c   :  { %3391 = vmatprep.subr.bf16.mxu0 %v3718_v1  ;;  %3413 = vmatprep.mubr.msk.bf16.mxu1 %vm3719_vm0, %v3718_v1 }
 0xf1f   :  { %3392 = vmatpush3.bf16.msra.mxu0 %v3599_v49 }
 0xf20   :  { %3405 = vmatprep.subr.bf16.mxu0 %v3718_v1 }
 0xf22   :  { %3394 = vmatmul.mubr.msk.bf16.vlgmr.msra.gmra.mxu0 %vm68_vm1, %v1501_v46 }
 0xf23   :  { %3407 = vmatprep.mubr.msk.bf16.mxu0 %vm3719_vm0, %v3718_v1 }
 0xfda   :  { %v1563_v53 = vpop.f32.mrf.mxu0  ;;  %v1687_v54 = vpop.f32.mrf.mxu1 }
 0xfdb   :  { %v1688_v40 = vadd.f32 %v1687_v54, %v1640_v31  ;;  %v1564_v17 = vadd.f32 %v1563_v53, %v1513_v35 }
 0xfdc   :  { %v3387_v32 = vpop.f32.mrf.mxu0  ;;  %v3403_v24 = vpop.f32.mrf.mxu1 }
 0xfdd   :  { %v4190_v37 = vpack.c.bf16 %v1688_v40, %v1688_v40  ;;  %v4194_v56 = vpack.c.bf16 %v1564_v17, %v1564_v17 }
 0xfde   :  { %v1566_v25 = vpop.f32.mrf.mxu0  ;;  %v1690_v27 = vpop.f32.mrf.mxu1 }
 0xfdf   :  { %v1691_v50 = vadd.f32 %v1690_v27, %v1640_v31  ;;  %v1567_v55 = vadd.f32 %v1566_v25, %v1513_v35  ;;  %v1820_v58 = vsel %vm398_vm3, %v4190_v37, 0 }
 0xfe0   :  { %v3388_v28 = vpop.f32.mrf.mxu0  ;;  %v3404_v29 = vpop.f32.mrf.mxu1 }
 0xfe1   :  { %v4197_v57 = vpack.c.bf16 %v1691_v50, %v1691_v50  ;;  %v4205_v60 = vpack.c.bf16 %v1567_v55, %v1567_v55 }
 0xfe2   :  { %v1625_v30 = vpop.f32.mrf.mxu0 }
 0xfe3   :  { %v1626_v33 = vadd.f32 %v1625_v30, %v1578_v7  ;;  %v1866_v61 = vsel %vm398_vm3, %v4197_v57, 0 }
 0xfe4   :  { %v3395_v45 = vpop.f32.mrf.mxu0 }
 0xfe5   :  { %v4183_v39 = vpack.c.bf16 %v1626_v33, %v1626_v33 }
 0xfe6   :  { %v1628_v34 = vpop.f32.mrf.mxu0 }
 0xfe7   :  { %v1629_v42 = vadd.f32 %v1628_v34, %v1578_v7  ;;  %v1704_v43 = vsel %vm278_vm2, %v4183_v39, 0 }
 0xfe8   :  { %v3396_v44 = vpop.f32.mrf.mxu0  ;;  %3406 = vmatpush3.bf16.xpose.msra.mxu0 %v1704_v43 }
 0xfe9   :  { %v4187_v47 = vpack.c.bf16 %v1629_v42, %v1629_v42  ;;  %3417 = vmatprep.subr.bf16.mxu0 %v3718_v1 }
 0xfeb   :  { %v1750_v52 = vsel %vm278_vm2, %v4187_v47, 0 }
 0xfec   :  { %3412 = vmatpush3.bf16.xpose.msra.mxu1 %v1750_v52 }
 0xfed   :  { %3423 = vmatprep.subr.bf16.mxu1 %v3718_v1 }
 0xfef   :  { %3408 = vmatmul.mubr.msk.bf16.vlgmr.msra.gmra.mxu0 %vm278_vm2, %v4194_v56 }
 0xff0   :  { %3418 = vmatpush3.bf16.msra.mxu0 %v1820_v58  ;;  %3419 = vmatprep.mubr.msk.bf16.mxu0 %vm3719_vm0, %v3718_v1 }
 0xff1   :  { %3429 = vmatprep.subr.bf16.mxu0 %v3718_v1 }
 0xff3   :  { %3414 = vmatmul.mubr.msk.bf16.vlgmr.msra.gmra.mxu1 %vm278_vm2, %v4205_v60 }
 0xff4   :  { %3424 = vmatpush3.bf16.msra.mxu1 %v1866_v61  ;;  %3425 = vmatprep.mubr.msk.bf16.mxu1 %vm3719_vm0, %v3718_v1 }
 0xff5   :  { %3435 = vmatprep.subr.bf16.mxu1 %v3718_v1 }
0x10af   :  { %v1740_v0 = vpop.f32.mrf.mxu0 }
0x10b0   :  { %v1741_v2 = vadd.f32 %v1740_v0, %v3901_v59 }
0x10b1   :  { %v3409_v3 = vpop.f32.mrf.mxu0 }
0x10b2   :  { %v1792_v4 = vsel %vm278_vm2, %v1741_v2, -inf }
0x10b3   :  { %1793 = vmax.xlane.f32.xlu1 %v1792_v4  ;;  %v1743_v5 = vpop.f32.mrf.mxu0  ;;  %v1786_v8 = vpop.f32.mrf.mxu1 }
0x10b4   :  { %v1787_v9 = vadd.f32 %v1786_v8, %v3905_v63 }
0x10b5   :  { %v3410_v10 = vpop.f32.mrf.mxu0  ;;  %v3415_v48 = vpop.f32.mrf.mxu1 }
0x10b6   :  { %v1795_v11 = vsel %vm278_vm2, %v1787_v9, -inf }
0x10b7   :  { %1796 = vmax.xlane.f32.xlu0 %v1795_v11  ;;  %v1789_v12 = vpop.f32.mrf.mxu1 }
0x10b9   :  { %v3416_v14 = vpop.f32.mrf.mxu1 }
0x10c4   :  { %1912 = vrot.lane.b32.xlu1 %v4183_v39, %s3720_s15 }
0x113c   :  { %v1794_v16 = vpop.xlane.xlu1 %1793 }
0x113d   :  { %v1798_v18 = vsub.f32 %v1741_v2, %v1794_v16 }
0x113f   :  { %v1800_v19 = vmul.f32 1.442695, %v1798_v18 }
0x1140   :  { %v1797_v20 = vpop.xlane.xlu0 %1796  ;;  %v1913_v24 = vpop.permute.xlu1 %1912 }
0x1141   :  { %3652 = vpow2.f32 %v1800_v19  ;;  %v1799_v26 = vsub.f32 %v1787_v9, %v1797_v20  ;;  %v1918_v31 = vsel %vm278_vm2, %v1913_v24, 0 }
0x1143   :  { %v1802_v46 = vmul.f32 1.442695, %v1799_v26 }
0x1145   :  { %3654 = vpow2.f32 %v1802_v46 }
0x114e   :  { %v3653_v49 = vpop.eup %3652 }
0x114f   :  { %v1804_v53 = vsel %vm278_vm2, %v3653_v49, 0.0 }
0x1150   :  { %1805 = vadd.xlane.f32.xlu1 %v1804_v53 }
0x1152   :  { %v3655_v54 = vpop.eup %3654 }
0x1153   :  { %v1807_v32 = vsel %vm278_vm2, %v3655_v54, 0.0 }
0x1154   :  { %1808 = vadd.xlane.f32.xlu0 %v1807_v32 }
0x1161   :  { %1909 = vrot.lane.b32.xlu1 %v4194_v56, %s3720_s15 }
0x1165   :  { %1961 = vrot.lane.b32.xlu1 %v4205_v60, %s3720_s15 }
0x116a   :  { %1964 = vrot.lane.b32.xlu0 %v4187_v47, %s3720_s15 }
0x11d9   :  { %v1806_v25 = vpop.xlane.xlu1 %1805 }
0x11da   :  { %3656 = vrcp.f32 %v1806_v25 }
0x11dd   :  { %v1809_v27 = vpop.xlane.xlu0 %1808  ;;  %v1910_v40 = vpop.permute.xlu1 %1909 }
0x11de   :  { %3658 = vrcp.f32 %v1809_v27 }
0x11e1   :  { %v1965_v45 = vpop.permute.xlu0 %1964  ;;  %v1962_v42 = vpop.permute.xlu1 %1961 }
0x11e2   :  { %v1970_v34 = vsel %vm278_vm2, %v1965_v45, 0 }
0x11e7   :  { %v3657_v7 = vpop.eup %3656 }
0x11e8   :  { %v1812_v28 = vmul.f32 %v3657_v7, %v3653_v49 }
0x11ea   :  { %v1814_v29 = vpack.c.bf16 %v1812_v28, %v1812_v28 }
0x11eb   :  { %v3659_v30 = vpop.eup %3658 }
0x11ec   :  { %3420 = vmatmul.mubr.msk.bf16.vlgmr.msra.gmra.mxu0 %vm278_vm2, %v1814_v29  ;;  %v1813_v33 = vmul.f32 %v3659_v30, %v3655_v54 }
0x11ed   :  { %3430 = vmatpush3.bf16.xpose.msra.mxu0 %v1918_v31  ;;  %3431 = vmatprep.mubr.msk.bf16.mxu0 %vm3719_vm0, %v3718_v1 }
0x11ee   :  { %v1815_v35 = vpack.c.bf16 %v1813_v33, %v1813_v33  ;;  %3441 = vmatprep.subr.bf16.mxu0 %v3718_v1 }
0x11f0   :  { %3426 = vmatmul.mubr.msk.bf16.vlgmr.msra.gmra.mxu1 %vm278_vm2, %v1815_v35 }
0x11f1   :  { %3436 = vmatpush3.bf16.xpose.msra.mxu1 %v1970_v34  ;;  %3437 = vmatprep.mubr.msk.bf16.mxu1 %vm3719_vm0, %v3718_v1 }
0x11f2   :  { %3447 = vmatprep.subr.bf16.mxu1 %v3718_v1 }
0x11f4   :  { %3432 = vmatmul.mubr.msk.bf16.vlgmr.msra.gmra.mxu0 %vm278_vm2, %v1910_v40 }
0x11f5   :  { %3443 = vmatprep.mubr.msk.bf16.mxu0 %vm3719_vm0, %v3718_v1 }
0x11f8   :  { %3438 = vmatmul.mubr.msk.bf16.vlgmr.msra.gmra.mxu1 %vm278_vm2, %v1962_v42 }
0x11f9   :  { %3449 = vmatprep.mubr.msk.bf16.mxu1 %vm3719_vm0, %v3718_v1 }
0x12ac   :  { %v4245_v43 = vpop.f32.mrf.mxu0 }
0x12ae   :  { %v3421_v44 = vpop.f32.mrf.mxu0 }
0x12b0   :  { %v1859_v17 = vpop.f32.mrf.mxu0  ;;  %v4247_v50 = vpop.f32.mrf.mxu1 }
0x12b2   :  { %v3422_v52 = vpop.f32.mrf.mxu0  ;;  %v3427_v55 = vpop.f32.mrf.mxu1 }
0x12b4   :  { %v1905_v58 = vpop.f32.mrf.mxu1  ;;  %v1954_v61 = vpop.f32.mrf.mxu0 }
0x12b5   :  { %v1955_v0 = vadd.f32 %v1954_v61, %v3901_v59 }
0x12b6   :  { %v3428_v2 = vpop.f32.mrf.mxu1  ;;  %v3433_v3 = vpop.f32.mrf.mxu0 }
0x12b7   :  { %v2012_v4 = vsel %vm278_vm2, %v1955_v0, -inf }
0x12b8   :  { %2013 = vmax.xlane.f32.xlu1 %v2012_v4  ;;  %v1957_v5 = vpop.f32.mrf.mxu0  ;;  %v2006_v8 = vpop.f32.mrf.mxu1 }
0x12b9   :  { %v2007_v9 = vadd.f32 %v2006_v8, %v3905_v63 }
0x12ba   :  { %v3434_v10 = vpop.f32.mrf.mxu0  ;;  %v3439_v48 = vpop.f32.mrf.mxu1 }
0x12bb   :  { %v2015_v11 = vsel %vm278_vm2, %v2007_v9, -inf }
0x12bc   :  { %2016 = vmax.xlane.f32.xlu0 %v2015_v11  ;;  %v2009_v12 = vpop.f32.mrf.mxu1 }
0x12be   :  { %v3440_v14 = vpop.f32.mrf.mxu1 }
0x12c9   :  { %2037 = vrot.lane.b32.xlu1 %v4190_v37, %s3720_s15 }
0x12cd   :  { %2136 = vrot.lane.b32.xlu1 %v4183_v39, %s3722_s1 }
0x12d1   :  { %2186 = vrot.lane.b32.xlu1 %v4187_v47, %s3722_s1 }
0x12d5   :  { %2134 = vrot.lane.b32.xlu1 %v4194_v56, %s3722_s1 }
0x1341   :  { %v2014_v16 = vpop.xlane.xlu1 %2013 }
0x1342   :  { %v2018_v18 = vsub.f32 %v1955_v0, %v2014_v16 }
0x1344   :  { %v2020_v19 = vmul.f32 1.442695, %v2018_v18 }
0x1345   :  { %v2038_v20 = vpop.permute.xlu1 %2037  ;;  %v2017_v26 = vpop.xlane.xlu0 %2016 }
0x1346   :  { %3660 = vpow2.f32 %v2020_v19  ;;  %v2043_v46 = vsel %vm398_vm3, %v2038_v20, 0  ;;  %v2019_v49 = vsub.f32 %v2007_v9, %v2017_v26 }
0x1347   :  { %3442 = vmatpush3.bf16.msra.mxu0 %v2043_v46 }
0x1348   :  { %v2022_v53 = vmul.f32 1.442695, %v2019_v49  ;;  %3453 = vmatprep.subr.bf16.mxu0 %v3718_v1 }
0x1349   :  { %v2137_v31 = vpop.permute.xlu1 %2136 }
0x134a   :  { %3662 = vpow2.f32 %v2022_v53  ;;  %v2142_v34 = vsel %vm278_vm2, %v2137_v31, 0 }
0x134d   :  { %v2187_v42 = vpop.permute.xlu1 %2186 }
0x134e   :  { %v2192_v17 = vsel %vm278_vm2, %v2187_v42, 0 }
0x1351   :  { %v2135_v52 = vpop.permute.xlu1 %2134 }
0x1353   :  { %v3661_v54 = vpop.eup %3660 }
0x1354   :  { %v2024_v32 = vsel %vm278_vm2, %v3661_v54, 0.0 }
0x1355   :  { %2025 = vadd.xlane.f32.xlu0 %v2024_v32 }
0x1357   :  { %v3663_v24 = vpop.eup %3662 }
0x1358   :  { %v2027_v25 = vsel %vm278_vm2, %v3663_v24, 0.0 }
0x1359   :  { %2028 = vadd.xlane.f32.xlu0 %v2027_v25 }
0x136f   :  { %2086 = vrot.lane.b32.xlu0 %v4197_v57, %s3720_s15  ;;  %s3011_s15 = sshll.u32 %s3727_s16, 4  ;;  %s3012_s15 = int_to_ptr.vmem [resolvable:$true] %s3011_s15 }
0x1370   :  { %p3701_p1 = scmp.lt.s32.totalorder %s3012_s15, %s3012_s15 }
0x1373   :  { %2184 = vrot.lane.b32.xlu0 %v4205_v60, %s3722_s1 }
0x13de   :  { %v2026_v27 = vpop.xlane.xlu0 %2025 }
0x13df   :  { %3664 = vrcp.f32 %v2026_v27 }
0x13e2   :  { %v2029_v7 = vpop.xlane.xlu0 %2028 }
0x13e3   :  { %3666 = vrcp.f32 %v2029_v7 }
0x13e6   :  { %v2087_v28 = vpop.permute.xlu0 %2086 }
0x13e7   :  { %v2092_v29 = vsel %vm398_vm3, %v2087_v28, 0 }
0x13e8   :  { %3448 = vmatpush3.bf16.msra.mxu1 %v2092_v29 }
0x13e9   :  { %3459 = vmatprep.subr.bf16.mxu1 %v3718_v1 }
0x13ea   :  { %v2185_v55 = vpop.permute.xlu0 %2184 }
0x13ec   :  { %v3665_v30 = vpop.eup %3664 }
0x13ed   :  { %v2032_v33 = vmul.f32 %v3665_v30, %v3661_v54 }
0x13ef   :  { %v2034_v45 = vpack.c.bf16 %v2032_v33, %v2032_v33 }
0x13f0   :  { %v3667_v35 = vpop.eup %3666 }
0x13f1   :  { %3444 = vmatmul.mubr.msk.bf16.vlgmr.msra.gmra.mxu0 %vm278_vm2, %v2034_v45  ;;  %v2033_v40 = vmul.f32 %v3667_v35, %v3663_v24 }
0x13f2   :  { %3454 = vmatpush3.bf16.xpose.msra.mxu0 %v2142_v34  ;;  %3455 = vmatprep.mubr.msk.bf16.mxu0 %vm3719_vm0, %v3718_v1 }
0x13f3   :  { %v2035_v44 = vpack.c.bf16 %v2033_v40, %v2033_v40  ;;  %3465 = vmatprep.subr.bf16.mxu0 %v3718_v1 }
0x13f5   :  { %3450 = vmatmul.mubr.msk.bf16.vlgmr.msra.gmra.mxu1 %vm278_vm2, %v2035_v44 }
0x13f6   :  { %3460 = vmatpush3.bf16.xpose.msra.mxu1 %v2192_v17  ;;  %3461 = vmatprep.mubr.msk.bf16.mxu1 %vm3719_vm0, %v3718_v1 }
0x13f7   :  { %3471 = vmatprep.subr.bf16.mxu1 %v3718_v1 }
0x13f9   :  { %3456 = vmatmul.mubr.msk.bf16.vlgmr.msra.gmra.mxu0 %vm278_vm2, %v2135_v52 }
0x13fa   :  { %3467 = vmatprep.mubr.msk.bf16.mxu0 %vm3719_vm0, %v3718_v1 }
0x13fd   :  { %3462 = vmatmul.mubr.msk.bf16.vlgmr.msra.gmra.mxu1 %vm278_vm2, %v2185_v55 }
0x13fe   :  { %3473 = vmatprep.mubr.msk.bf16.mxu1 %vm3719_vm0, %v3718_v1 }
0x14b1   :  { %v4287_v58 = vpop.f32.mrf.mxu0 }
0x14b3   :  { %v3445_v61 = vpop.f32.mrf.mxu0 }
0x14b5   :  { %v2082_v0 = vpop.f32.mrf.mxu0  ;;  %v4289_v2 = vpop.f32.mrf.mxu1 }
0x14b6   :  { %v3565_v3 = vpack.i.bf16 %v4289_v2, %v4287_v58 }
0x14b7   :  { %v3446_v4 = vpop.f32.mrf.mxu0  ;;  %v3451_v5 = vpop.f32.mrf.mxu1 }
0x14b9   :  { %v2131_v8 = vpop.f32.mrf.mxu1  ;;  %v2178_v9 = vpop.f32.mrf.mxu0 }
0x14ba   :  { %v2179_v10 = vadd.f32 %v2178_v9, %v3901_v59 }
0x14bb   :  { %v3452_v48 = vpop.f32.mrf.mxu1  ;;  %v3457_v11 = vpop.f32.mrf.mxu0 }
0x14bc   :  { %v2234_v12 = vsel %vm278_vm2, %v2179_v10, -inf }
0x14bd   :  { %2235 = vmax.xlane.f32.xlu1 %v2234_v12  ;;  %v2181_v14 = vpop.f32.mrf.mxu0  ;;  %v2228_v16 = vpop.f32.mrf.mxu1 }
0x14be   :  { %v2229_v18 = vadd.f32 %v2228_v16, %v3905_v63 }
0x14bf   :  { %v3458_v19 = vpop.f32.mrf.mxu0  ;;  %v3463_v20 = vpop.f32.mrf.mxu1 }
0x14c0   :  { %v2237_v26 = vsel %vm278_vm2, %v2229_v18, -inf }
0x14c1   :  { %2238 = vmax.xlane.f32.xlu0 %v2237_v26  ;;  %v2231_v46 = vpop.f32.mrf.mxu1 }
0x14c3   :  { %v3464_v49 = vpop.f32.mrf.mxu1 }
0x14ce   :  { %2258 = vrot.lane.b32.xlu1 %v4190_v37, %s3722_s1 }
0x14d2   :  { %2356 = vrot.lane.b32.xlu1 %v4183_v39, %s3723_s18 }
0x14d6   :  { %2406 = vrot.lane.b32.xlu1 %v4187_v47, %s3723_s18 }
0x14da   :  { %2354 = vrot.lane.b32.xlu1 %v4194_v56, %s3723_s18 }
0x1546   :  { %v2236_v53 = vpop.xlane.xlu1 %2235 }
0x1547   :  { %v2240_v54 = vsub.f32 %v2179_v10, %v2236_v53 }
0x1549   :  { %v2242_v32 = vmul.f32 1.442695, %v2240_v54 }
0x154a   :  { %v2259_v24 = vpop.permute.xlu1 %2258  ;;  %v2239_v25 = vpop.xlane.xlu0 %2238 }
0x154b   :  { %3668 = vpow2.f32 %v2242_v32  ;;  %v2264_v27 = vsel %vm398_vm3, %v2259_v24, 0  ;;  %v2241_v7 = vsub.f32 %v2229_v18, %v2239_v25 }
0x154c   :  { %3466 = vmatpush3.bf16.msra.mxu0 %v2264_v27 }
0x154d   :  { %v2244_v28 = vmul.f32 1.442695, %v2241_v7  ;;  %3477 = vmatprep.subr.bf16.mxu0 %v3718_v1 }
0x154e   :  { %v2357_v34 = vpop.permute.xlu1 %2356 }
0x154f   :  { %3670 = vpow2.f32 %v2244_v28  ;;  %v2362_v17 = vsel %vm278_vm2, %v2357_v34, 0 }
0x1552   :  { %v2407_v52 = vpop.permute.xlu1 %2406 }
0x1553   :  { %v2412_v61 = vsel %vm278_vm2, %v2407_v52, 0 }
0x1556   :  { %v2355_v0 = vpop.permute.xlu1 %2354 }
0x1558   :  { %v3669_v39 = vpop.eup %3668 }
0x1559   :  { %v2246_v47 = vsel %vm278_vm2, %v3669_v39, 0.0 }
0x155a   :  { %2247 = vadd.xlane.f32.xlu0 %v2246_v47 }
0x155c   :  { %v3671_v29 = vpop.eup %3670 }
0x155d   :  { %v2249_v56 = vsel %vm278_vm2, %v3671_v29, 0.0 }
0x155e   :  { %2250 = vadd.xlane.f32.xlu0 %v2249_v56 }
0x1574   :  { %2306 = vrot.lane.b32.xlu0 %v4197_v57, %s3722_s1  ;;  %s3696_s1 = scalar_lea.vmem %s3012_s15, 32 }
0x1575   :  { %p3697_p0 = scmp.ne.s32.totalorder %s3012_s15, %s3696_s1  ;;  %p3702_p2 = scmp.lt.s32.totalorder %s3696_s1, %s3696_s1 }
0x1577   :  { %p3703_p3 = por %p3702_p2, %p3701_p1 }
0x1578   :  { %2404 = vrot.lane.b32.xlu0 %v4205_v60, %s3723_s18 }
0x1579   :  { %p3704_p4 = pnand %p3703_p3, %p3697_p0 }
0x15e3   :  { %v2248_v30 = vpop.xlane.xlu0 %2247 }
0x15e4   :  { %3672 = vrcp.f32 %v2248_v30 }
0x15e7   :  { %v2251_v31 = vpop.xlane.xlu0 %2250 }
0x15e8   :  { %3674 = vrcp.f32 %v2251_v31 }
0x15eb   :  { %v2307_v33 = vpop.permute.xlu0 %2306 }
0x15ec   :  { %v2312_v45 = vsel %vm398_vm3, %v2307_v33, 0 }
0x15ed   :  { %3472 = vmatpush3.bf16.msra.mxu1 %v2312_v45 }
0x15ee   :  { %3483 = vmatprep.subr.bf16.mxu1 %v3718_v1 }
0x15ef   :  { %v2405_v4 = vpop.permute.xlu0 %2404 }
0x15f1   :  { %v3673_v35 = vpop.eup %3672 }
0x15f2   :  { %v2254_v40 = vmul.f32 %v3673_v35, %v3669_v39 }
0x15f4   :  { %v2256_v42 = vpack.c.bf16 %v2254_v40, %v2254_v40 }
0x15f5   :  { %v3675_v44 = vpop.eup %3674 }
0x15f6   :  { %3468 = vmatmul.mubr.msk.bf16.vlgmr.msra.gmra.mxu0 %vm278_vm2, %v2256_v42  ;;  %v2255_v60 = vmul.f32 %v3675_v44, %v3671_v29 }
0x15f7   :  { %3478 = vmatpush3.bf16.xpose.msra.mxu0 %v2362_v17  ;;  %3479 = vmatprep.mubr.msk.bf16.mxu0 %vm3719_vm0, %v3718_v1  ;;  %v3600_v17 = vld [vmem:[%s4462_s5 + $0x18] sm:$0xff]  }
0x15f8   :  { %v2257_v55 = vpack.c.bf16 %v2255_v60, %v2255_v60  ;;  %3489 = vmatprep.subr.bf16.mxu0 %v3718_v1  ;;  %v3601_v60 = vld [vmem:[%s4462_s5 + $0x10] sm:$0xff]  }
0x15fa   :  { %3474 = vmatmul.mubr.msk.bf16.vlgmr.msra.gmra.mxu1 %vm278_vm2, %v2257_v55 }
0x15fb   :  { %3484 = vmatpush3.bf16.xpose.msra.mxu1 %v2412_v61  ;;  %3485 = vmatprep.mubr.msk.bf16.mxu1 %vm3719_vm0, %v3718_v1 }
0x15fc   :  { %3495 = vmatprep.subr.bf16.mxu1 %v3718_v1 }
0x15fe   :  { %3480 = vmatmul.mubr.msk.bf16.vlgmr.msra.gmra.mxu0 %vm278_vm2, %v2355_v0 }
0x15ff   :  { %3491 = vmatprep.mubr.msk.bf16.mxu0 %vm3719_vm0, %v3718_v1 }
0x1602   :  { %3486 = vmatmul.mubr.msk.bf16.vlgmr.msra.gmra.mxu1 %vm278_vm2, %v2405_v4 }
0x1603   :  { %3497 = vmatprep.mubr.msk.bf16.mxu1 %vm3719_vm0, %v3718_v1 }
0x16b6   :  { %v2300_v5 = vpop.f32.mrf.mxu0 }
0x16b8   :  { %v3469_v8 = vpop.f32.mrf.mxu0 }
0x16ba   :  { %v2303_v9 = vpop.f32.mrf.mxu0  ;;  %v2348_v10 = vpop.f32.mrf.mxu1 }
0x16bc   :  { %v3470_v48 = vpop.f32.mrf.mxu0  ;;  %v3475_v11 = vpop.f32.mrf.mxu1 }
0x16be   :  { %v2351_v12 = vpop.f32.mrf.mxu1  ;;  %v2398_v14 = vpop.f32.mrf.mxu0 }
0x16bf   :  { %v2399_v16 = vadd.f32 %v2398_v14, %v3901_v59  ;;  %v3570_v59 = vpack.i.bf16 %v2348_v10, %v2300_v5 }
0x16c0   :  { %v3476_v18 = vpop.f32.mrf.mxu1  ;;  %v3481_v19 = vpop.f32.mrf.mxu0 }
0x16c1   :  { %v2454_v20 = vsel %vm278_vm2, %v2399_v16, -inf }
0x16c2   :  { %2455 = vmax.xlane.f32.xlu1 %v2454_v20  ;;  %v2401_v26 = vpop.f32.mrf.mxu0  ;;  %v2448_v46 = vpop.f32.mrf.mxu1 }
0x16c3   :  { %v2449_v49 = vadd.f32 %v2448_v46, %v3905_v63 }
0x16c4   :  { %v3482_v53 = vpop.f32.mrf.mxu0  ;;  %v3487_v54 = vpop.f32.mrf.mxu1 }
0x16c5   :  { %v2457_v32 = vsel %vm278_vm2, %v2449_v49, -inf }
0x16c6   :  { %2458 = vmax.xlane.f32.xlu0 %v2457_v32  ;;  %v2451_v24 = vpop.f32.mrf.mxu1 }
0x16c8   :  { %v3488_v25 = vpop.f32.mrf.mxu1 }
0x16d3   :  { %2478 = vrot.lane.b32.xlu1 %v4190_v37, %s3723_s18 }
0x16d7   :  { %3566 = vrot.lane.b32.xlu1 %v3565_v3, %s3724_s19 }
0x16db   :  { %3571 = vrot.lane.b32.xlu1 %v3570_v59, %s3725_s20 }
0x174b   :  { %v2456_v27 = vpop.xlane.xlu1 %2455 }
0x174c   :  { %v2460_v63 = vsub.f32 %v2399_v16, %v2456_v27 }
0x174e   :  { %v2462_v7 = vmul.f32 1.442695, %v2460_v63 }
0x174f   :  { %v2479_v28 = vpop.permute.xlu1 %2478  ;;  %v2459_v39 = vpop.xlane.xlu0 %2458 }
0x1750   :  { %3676 = vpow2.f32 %v2462_v7  ;;  %v2484_v47 = vsel %vm398_vm3, %v2479_v28, 0  ;;  %v2461_v29 = vsub.f32 %v2449_v49, %v2459_v39 }
0x1751   :  { %3490 = vmatpush3.bf16.msra.mxu0 %v2484_v47 }
0x1752   :  { %v2464_v56 = vmul.f32 1.442695, %v2461_v29  ;;  %3501 = vmatprep.subr.bf16.mxu0 %v3718_v1 }
0x1753   :  { %v3567_v48 = vpop.permute.xlu1 %3566 }
0x1754   :  { %3678 = vpow2.f32 %v2464_v56  ;;  %v3569_v12 = vunpack.i.h.bf16 %v3567_v48  ;;  %v3568_v14 = vunpack.i.l.bf16 %v3567_v48 }
0x1756   :  { %v2599_v20 = vsel %vm278_vm2, %v4247_v50, %v3569_v12  ;;  %v2598_v26 = vsel %vm278_vm2, %v4245_v43, %v3568_v14  ;;  %v2613_v43 = vrot.slane %v4174_v36, %v1193_v51  ;;  %v3607_v12 = vld [vmem:[%s4464_s7 + $0x20] sm:$0xff]   ;;  %v2719_v14 = vrot.slane %v4174_v36, %v1299_v62 }
0x1757   :  { %v3572_v11 = vpop.permute.xlu1 %3571 }
0x1758   :  { %v3574_v16 = vunpack.i.h.bf16 %v3572_v11  ;;  %v3573_v18 = vunpack.i.l.bf16 %v3572_v11  ;;  %v3606_v11 = vld [vmem:[%s4464_s7 + $0x28] sm:$0xff]  }
0x175a   :  { %v2601_v53 = vsel %vm1180_vm4, %v2599_v20, %v3574_v16  ;;  %v2600_v54 = vsel %vm1180_vm4, %v2598_v26, %v3573_v18 }
0x175d   :  { %v3677_v37 = vpop.eup %3676 }
0x175e   :  { %v2466_v58 = vsel %vm278_vm2, %v3677_v37, 0.0 }
0x175f   :  { %2467 = vadd.xlane.f32.xlu0 %v2466_v58 }
0x1761   :  { %v3679_v2 = vpop.eup %3678 }
0x1762   :  { %v2469_v3 = vsel %vm278_vm2, %v3679_v2, 0.0 }
0x1763   :  { %2470 = vadd.xlane.f32.xlu0 %v2469_v3 }
0x1779   :  { %2526 = vrot.lane.b32.xlu0 %v4197_v57, %s3723_s18 }
0x17e8   :  { %v2468_v30 = vpop.xlane.xlu0 %2467 }
0x17e9   :  { %3680 = vrcp.f32 %v2468_v30 }
0x17ec   :  { %v2471_v31 = vpop.xlane.xlu0 %2470 }
0x17ed   :  { %3682 = vrcp.f32 %v2471_v31 }
0x17f0   :  { %v2527_v33 = vpop.permute.xlu0 %2526 }
0x17f1   :  { %v2532_v45 = vsel %vm398_vm3, %v2527_v33, 0 }
0x17f2   :  { %3496 = vmatpush3.bf16.msra.mxu1 %v2532_v45 }
0x17f3   :  { %3509 = vmatprep.subr.bf16.mxu1 %v3718_v1 }
0x17f6   :  { %v3681_v35 = vpop.eup %3680 }
0x17f7   :  { %v2474_v34 = vmul.f32 %v3681_v35, %v3677_v37  ;;  %v3603_v35 = vld [vmem:[%s4463_s6 + $0x10] sm:$0xff]  }
0x17f9   :  { %v2476_v40 = vpack.c.bf16 %v2474_v34, %v2474_v34 }
0x17fa   :  { %v3683_v42 = vpop.eup %3682 }
0x17fb   :  { %3492 = vmatmul.mubr.msk.bf16.vlgmr.msra.gmra.mxu0 %vm278_vm2, %v2476_v40  ;;  %v2475_v44 = vmul.f32 %v3683_v42, %v3679_v2 }
0x17fc   :  { %3505 = vmatprep.mubr.msk.bf16.mxu0 %vm3719_vm0, %v3718_v1  ;;  %3502 = vmatpush3.bf16.msra.mxu0 %v3600_v17 }
0x17fd   :  { %v2477_v57 = vpack.c.bf16 %v2475_v44, %v2475_v44  ;;  %3503 = vmatprep.subr.bf16.mxu0 %v3718_v1 }
0x17ff   :  { %3498 = vmatmul.mubr.msk.bf16.vlgmr.msra.gmra.mxu1 %vm278_vm2, %v2477_v57 }
0x1800   :  { %3513 = vmatprep.mubr.msk.bf16.mxu1 %vm3719_vm0, %v3718_v1  ;;  %3504 = vmatpush3.bf16.msra.mxu0 %v3601_v60 }
0x1801   :  { %3517 = vmatprep.subr.bf16.mxu0 %v3718_v1 }
0x18bb   :  { %v2520_v52 = vpop.f32.mrf.mxu0 }
0x18bd   :  { %v3493_v55 = vpop.f32.mrf.mxu0 }
0x18be   :  { %v2701_v55 = vrot.slane %v4174_v36, %v1282_v38  ;;  %v3604_v38 = vld [vmem:[%s4464_s7 + $0x38] sm:$0xff]  }
0x18bf   :  { %v2523_v61 = vpop.f32.mrf.mxu0  ;;  %v2568_v0 = vpop.f32.mrf.mxu1 }
0x18c0   :  { %v3575_v4 = vpack.i.bf16 %v2568_v0, %v2520_v52 }
0x18c1   :  { %v3494_v5 = vpop.f32.mrf.mxu0  ;;  %v3499_v8 = vpop.f32.mrf.mxu1 }
0x18c2   :  { %3576 = vrot.lane.b32.xlu1 %v3575_v4, %s3726_s25  ;;  %v2707_v5 = vrot.slane %v4174_v36, %v1288_v41  ;;  %v3605_v41 = vld [vmem:[%s4464_s7 + $0x30] sm:$0xff]  }
0x18c3   :  { %v2571_v9 = vpop.f32.mrf.mxu1 }
0x18c5   :  { %v3500_v10 = vpop.f32.mrf.mxu1 }
0x1934   :  { %v3577_v19 = vpop.permute.xlu1 %3576 }
0x1935   :  { %v3579_v46 = vunpack.i.h.bf16 %v3577_v19  ;;  %v3578_v49 = vunpack.i.l.bf16 %v3577_v19 }
0x1937   :  { %v2603_v32 = vsel %vm1183_vm5, %v2601_v53, %v3579_v46  ;;  %v2602_v24 = vsel %vm1183_vm5, %v2600_v54, %v3578_v49 }
0x1938   :  { %v2604_v25 = vpack.c.bf16 %v2603_v32, %v2602_v24 }
0x193a   :  { %3506 = vmatmul.mubr.msk.bf16.vlgmr.msra.gmra.mxu0 %vm68_vm1, %v2604_v25 }
0x193b   :  { %3525 = vmatprep.mubr.msk.bf16.mxu0 %vm3719_vm0, %v3718_v1  ;;  %3518 = vmatpush3.bf16.msra.mxu0 %v3604_v38  ;;  %v3057_v38 = vld [vmem:[%s4465_s8 + $0x18] sm:$0x3] }
0x193c   :  { %3519 = vmatprep.subr.bf16.mxu0 %v3718_v1 }
0x193f   :  { %3520 = vmatpush3.bf16.msra.mxu0 %v3605_v41  ;;  %v2907_v41 = vrot.slane %v3057_v38, %v3854_v21  ;;  %v3122_v21 = vld [vmem:[%s4467_s10] ss:$0 sm:$0xff] }
0x1940   :  { %3521 = vmatprep.subr.bf16.mxu0 %v3718_v1 }
0x1943   :  { %3522 = vmatpush3.bf16.msra.mxu0 %v3606_v11 }
0x1944   :  { %3523 = vmatprep.subr.bf16.mxu0 %v3718_v1 }
0x1947   :  { %3524 = vmatpush3.bf16.msra.mxu0 %v3607_v12  ;;  %v2913_v12 = vrot.slane %v3057_v38, %v3844_v15 }
0x19fa   :  { %v2663_v50 = vpop.f32.mrf.mxu0 }
0x19fb   :  { %v2664_v59 = vadd.f32 %v2663_v50, %v2613_v43 }
0x19fc   :  { %v3507_v27 = vpop.f32.mrf.mxu0 }
0x19fd   :  { %v2670_v63 = vadd.f32 %v2664_v59, %v4148_v22 }
0x19fe   :  { %v2666_v7 = vpop.f32.mrf.mxu0 }
0x19ff   :  { %v2667_v28 = vadd.f32 %v2666_v7, %v2613_v43  ;;  %v2672_v39 = vsel %vm68_vm1, %v2670_v63, 0.0 }
0x1a00   :  { %2673 = vadd.xlane.f32.xlu0 %v2672_v39  ;;  %v3508_v47 = vpop.f32.mrf.mxu0 }
0x1a01   :  { %v2671_v29 = vadd.f32 %v2667_v28, %v4150_v23  ;;  %v3602_v23 = vld [vmem:[%s4463_s6 + $0x18] sm:$0xff]  }
0x1a02   :  { %3510 = vmatpush3.bf16.msra.mxu1 %v3602_v23 }
0x1a03   :  { %v2675_v56 = vsel %vm68_vm1, %v2671_v29, 0.0  ;;  %3511 = vmatprep.subr.bf16.mxu1 %v3718_v1 }
0x1a04   :  { %2676 = vadd.xlane.f32.xlu1 %v2675_v56 }
0x1a06   :  { %3512 = vmatpush3.bf16.msra.mxu1 %v3603_v35 }
0x1a07   :  { %3529 = vmatprep.subr.mxu1 %v3718_v1 }
0x1a89   :  { %v2674_v37 = vpop.xlane.xlu0 %2673 }
0x1a8a   :  { %v2678_v58 = vmul.f32 0.03125, %v2674_v37 }
0x1a8c   :  { %v2680_v2 = vsub.f32 %v2670_v63, %v2678_v58  ;;  %v2807_v58 = vrot.slane %v4174_v36, %v1386_v6 }
0x1a8d   :  { %v2677_v51 = vpop.xlane.xlu1 %2676 }
0x1a8e   :  { %v2679_v3 = vmul.f32 0.03125, %v2677_v51  ;;  %v2682_v30 = vmul.f32 %v2680_v2, %v2680_v2 }
0x1a90   :  { %v2681_v31 = vsub.f32 %v2671_v29, %v2679_v3  ;;  %v2684_v22 = vsel %vm68_vm1, %v2682_v30, 0.0 }
0x1a91   :  { %2685 = vadd.xlane.f32.xlu0 %v2684_v22 }
0x1a92   :  { %v2683_v33 = vmul.f32 %v2681_v31, %v2681_v31 }
0x1a94   :  { %v2687_v45 = vsel %vm68_vm1, %v2683_v33, 0.0 }
0x1a95   :  { %2688 = vadd.xlane.f32.xlu0 %v2687_v45 }
0x1b1a   :  { %v2686_v34 = vpop.xlane.xlu0 %2685 }
0x1b1b   :  { %v2690_v40 = vmul.f32 0.03125, %v2686_v34 }
0x1b1d   :  { %v2692_v42 = vadd.f32 1e-12, %v2690_v40 }
0x1b1e   :  { %v2689_v44 = vpop.xlane.xlu0 %2688 }
0x1b1f   :  { %3684 = vrsqrt.f32 %v2692_v42  ;;  %v2691_v57 = vmul.f32 0.03125, %v2689_v44 }
0x1b21   :  { %v2693_v17 = vadd.f32 1e-12, %v2691_v57 }
0x1b23   :  { %3686 = vrsqrt.f32 %v2693_v17 }
0x1b2c   :  { %v3685_v60 = vpop.eup %3684 }
0x1b2d   :  { %v2696_v52 = vmul.f32 %v3685_v60, %v2680_v2 }
0x1b2f   :  { %v2702_v4 = vmul.f32 %v2701_v55, %v2696_v52  ;;  %v2922_v52 = vld [vmem:[%s4466_s9 + $0x18] sm:$0xff] }
0x1b30   :  { %v3687_v61 = vpop.eup %3686 }
0x1b31   :  { %v2697_v0 = vmul.f32 %v3687_v61, %v2681_v31  ;;  %v2708_v9 = vadd.f32 %v2707_v5, %v2702_v4  ;;  %v2920_v61 = vld [vmem:[%s4466_s9 + $0x8] sm:$0xff] }
0x1b33   :  { %v2703_v8 = vmul.f32 %v2701_v55, %v2697_v0  ;;  %v2921_v55 = vld [vmem:[%s4466_s9 + $0x10] sm:$0xff]  ;;  %v2919_v0 = vld [vmem:[%s4466_s9] sm:$0xff] }
0x1b35   :  { %v2709_v10 = vadd.f32 %v2707_v5, %v2703_v8 }
0x1b37   :  { %v2710_v48 = vpack.c.bf16 %v2709_v10, %v2708_v9 }
0x1b39   :  { %3514 = vmatmul.mubr.msk.bf16.vlgmr.msra.gmra.mxu1 %vm68_vm1, %v2710_v48 }
0x1b3a   :  { %3537 = vmatprep.mubr.msk.f32.mxu1 %vm3719_vm0, %v3718_v1  ;;  %3530 = vmatpush3.msra.mxu1 %v2922_v52 }
0x1b3b   :  { %3531 = vmatprep.subr.mxu1 %v3718_v1 }
0x1b3c   :  { %3532 = vmatpush3.msra.mxu1 %v2921_v55 }
0x1b3d   :  { %3533 = vmatprep.subr.mxu1 %v3718_v1 }
0x1b3e   :  { %3534 = vmatpush3.msra.mxu1 %v2920_v61 }
0x1b3f   :  { %3535 = vmatprep.subr.mxu1 %v3718_v1 }
0x1b40   :  { %3536 = vmatpush3.msra.mxu1 %v2919_v0 }
0x1bf9   :  { %v2769_v16 = vpop.f32.mrf.mxu1 }
0x1bfa   :  { %v2770_v18 = vadd.f32 %v2769_v16, %v2719_v14 }
0x1bfb   :  { %v3515_v19 = vpop.f32.mrf.mxu1 }
0x1bfc   :  { %v2776_v20 = vmul.f32 %v2770_v18, %v2770_v18 }
0x1bfd   :  { %v2772_v26 = vpop.f32.mrf.mxu1 }
0x1bfe   :  { %v2778_v46 = vmul.f32 %v2776_v20, %v2770_v18  ;;  %v2773_v49 = vadd.f32 %v2772_v26, %v2719_v14 }
0x1bff   :  { %v3516_v53 = vpop.f32.mrf.mxu1 }
0x1c00   :  { %v2780_v54 = vmul.f32 0.044715, %v2778_v46  ;;  %v2777_v32 = vmul.f32 %v2773_v49, %v2773_v49 }
0x1c02   :  { %v2782_v24 = vadd.f32 %v2780_v54, %v2770_v18  ;;  %v2779_v25 = vmul.f32 %v2777_v32, %v2773_v49 }
0x1c04   :  { %v2784_v43 = vmul.f32 0.7978846, %v2782_v24  ;;  %v2781_v50 = vmul.f32 0.044715, %v2779_v25 }
0x1c06   :  { %3688 = vtanh.f32 %v2784_v43  ;;  %v2783_v59 = vadd.f32 %v2781_v50, %v2773_v49 }
0x1c08   :  { %v2785_v27 = vmul.f32 0.7978846, %v2783_v59 }
0x1c0a   :  { %3690 = vtanh.f32 %v2785_v27 }
0x1c13   :  { %v3689_v63 = vpop.eup %3688 }
0x1c14   :  { %v2788_v62 = vadd.f32 1.0, %v3689_v63 }
0x1c16   :  { %v2790_v28 = vmul.f32 0.5, %v2788_v62 }
0x1c17   :  { %v3691_v7 = vpop.eup %3690 }
0x1c18   :  { %v2789_v39 = vadd.f32 1.0, %v3691_v7  ;;  %v2792_v29 = vmul.f32 %v2790_v28, %v2770_v18 }
0x1c1a   :  { %v2791_v47 = vmul.f32 0.5, %v2789_v39 }
0x1c1c   :  { %v2793_v56 = vmul.f32 %v2791_v47, %v2773_v49 }
0x1c1e   :  { %v2794_v37 = vpack.c.bf16 %v2793_v56, %v2792_v29 }
0x1c20   :  { %3526 = vmatmul.mubr.msk.bf16.vlgmr.msra.gmra.mxu0 %vm1412_vm6, %v2794_v37 }
0x1ce0   :  { %v2869_v2 = vpop.f32.mrf.mxu0 }
0x1ce1   :  { %v2870_v51 = vadd.f32 %v2869_v2, %v2807_v58 }
0x1ce2   :  { %v3527_v3 = vpop.f32.mrf.mxu0 }
0x1ce3   :  { %v2876_v30 = vadd.f32 %v2870_v51, %v2708_v9 }
0x1ce4   :  { %v2872_v31 = vpop.f32.mrf.mxu0 }
0x1ce5   :  { %v2873_v22 = vadd.f32 %v2872_v31, %v2807_v58  ;;  %v2878_v33 = vsel %vm68_vm1, %v2876_v30, 0.0 }
0x1ce6   :  { %2879 = vadd.xlane.f32.xlu0 %v2878_v33  ;;  %v3528_v45 = vpop.f32.mrf.mxu0 }
0x1ce7   :  { %v2877_v23 = vadd.f32 %v2873_v22, %v2709_v10 }
0x1ce9   :  { %v2881_v35 = vsel %vm68_vm1, %v2877_v23, 0.0 }
0x1cea   :  { %2882 = vadd.xlane.f32.xlu1 %v2881_v35 }
0x1d6f   :  { %v2880_v34 = vpop.xlane.xlu0 %2879 }
0x1d70   :  { %v2884_v40 = vmul.f32 0.03125, %v2880_v34 }
0x1d72   :  { %v2886_v42 = vsub.f32 %v2876_v30, %v2884_v40 }
0x1d73   :  { %v2883_v13 = vpop.xlane.xlu1 %2882 }
0x1d74   :  { %v2885_v44 = vmul.f32 0.03125, %v2883_v13  ;;  %v2888_v6 = vmul.f32 %v2886_v42, %v2886_v42 }
0x1d76   :  { %v2887_v36 = vsub.f32 %v2877_v23, %v2885_v44  ;;  %v2890_v57 = vsel %vm68_vm1, %v2888_v6, 0.0 }
0x1d77   :  { %2891 = vadd.xlane.f32.xlu0 %v2890_v57 }
0x1d78   :  { %v2889_v17 = vmul.f32 %v2887_v36, %v2887_v36 }
0x1d7a   :  { %v2893_v60 = vsel %vm68_vm1, %v2889_v17, 0.0 }
0x1d7b   :  { %2894 = vadd.xlane.f32.xlu1 %v2893_v60 }
0x1e00   :  { %v2892_v4 = vpop.xlane.xlu0 %2891 }
0x1e01   :  { %v2896_v5 = vmul.f32 0.03125, %v2892_v4 }
0x1e03   :  { %v2898_v8 = vadd.f32 1e-12, %v2896_v5 }
0x1e04   :  { %v2895_v9 = vpop.xlane.xlu1 %2894 }
0x1e05   :  { %3692 = vrsqrt.f32 %v2898_v8  ;;  %v2897_v10 = vmul.f32 0.03125, %v2895_v9 }
0x1e07   :  { %v2899_v48 = vadd.f32 1e-12, %v2897_v10 }
0x1e09   :  { %3694 = vrsqrt.f32 %v2899_v48 }
0x1e12   :  { %v3693_v11 = vpop.eup %3692 }
0x1e13   :  { %v2902_v14 = vmul.f32 %v3693_v11, %v2886_v42 }
0x1e15   :  { %v2908_v1 = vmul.f32 %v2907_v41, %v2902_v14 }
0x1e16   :  { %v3695_v16 = vpop.eup %3694 }
0x1e17   :  { %v2914_v18 = vadd.f32 %v2913_v12, %v2908_v1  ;;  %v2903_v19 = vmul.f32 %v3695_v16, %v2887_v36 }
0x1e19   :  { %2916 = vst.msk [vmem:[#allocation2] sm:$0xff] %vm68_vm1, %v2914_v18  ;;  %v2909_v20 = vmul.f32 %v2907_v41, %v2903_v19 }
0x1e1b   :  { %v2915_v26 = vadd.f32 %v2913_v12, %v2909_v20 }
0x1e1d   :  { %2917 = vst.msk [vmem:[#allocation2 + $0x8] sm:$0xff] %vm68_vm1, %v2915_v26 }
0x1e24   :  { %v2918_v46 = vld [vmem:[#allocation2] ss:$8 sm:$0x3] }
0x1e25   :  { %3538 = vmatmul.mubr.msk.f32.vlgmr.msra.gmra.mxu1 %vm68_vm1, %v2918_v46 }
0x1ee5   :  { %v2999_v15 = vpop.f32.mrf.mxu1 }
0x1ee6   :  { %v3000_v49 = vadd.f32 %v3122_v21, %v2999_v15 }
0x1ee7   :  { %v3539_v53 = vpop.f32.mrf.mxu1 }
0x1ee8   :  { %3004 = vst.msk [vmem:[#allocation3] sm:$0x3] %vm3003_vm7, %v3000_v49 }
0x1ee9   :  { %3707 = shalt.err (!%p3704_p4)
}
0x1eea   :  { %3014 = dma.vmem_to_hbm [thread:$0]  %s3012_s15, 32, %s4468_s11, [#allocation4]  }
0x1eeb   :  { %3716 = dma.done.wait [#allocation4], 32  }
0x1eec   :  { %3717 = vsyncadd [#allocation4], 4294967264 }
0x1eed   :  { %3018 = vsyncpa [#allocation4], 1 }

</bundles_post_ra>
